<compile_context>
chip_gen: v7x
topology: tpu7x:2x2x1
jax: 0.10.0
libtpu: 0.0.40
codegen_flags: <defaults>
</compile_context>

<pallas_src>
import functools
import math

import jax
import jax.numpy as jnp
import numpy as np
from jax import lax
from jax.experimental import pallas as pl
from jax.experimental.pallas import tpu as pltpu


# ----------------------------- kernel helpers ------------------------------ #

def _batchnorm(h2, gamma, beta, eps=1e-5):
    """BatchNorm1d (training mode, biased variance) on a (B*N, E) slab.

    Centered variance (numerically safer than E[x^2]-E[x]^2), one fused
    scale/shift.  gamma/beta: (1, E) f32.  rsqrt runs on the EUP.
    """
    m = jnp.mean(h2, axis=0, keepdims=True)
    c = h2 - m
    var = jnp.mean(c * c, axis=0, keepdims=True)
    scale = lax.rsqrt(var + eps) * gamma
    return c * scale + beta


# --------------------------------- kernel ---------------------------------- #

def encoder_kernel(h0_ref,
                   wqkv_ref, bqkv_ref, wo_ref, bo_ref,
                   w1_ref, b1_ref, w2_ref, b2_ref,
                   g1_ref, t1_ref, g2_ref, t2_ref,
                   h_out_ref, g_out_ref, h_acc, *, n_heads):
    """One grid step == one encoder layer; hidden state carried in h_acc."""
    l = pl.program_id(0)
    M, E = h_acc.shape
    B, N, _ = h_out_ref.shape
    H = n_heads
    dh = E // H
    bf16 = jnp.bfloat16
    f32 = jnp.float32

    # ---- carry init on the first grid step (input projection done outside) ----
    @pl.when(l == 0)
    def _():
        h_acc[...] = h0_ref[...]

    h2 = h_acc[...]                                   # (M, E) f32 carry
    h2b = h2.astype(bf16)

    # ---- multi-head self-attention (q = k = v = h) ----
    # Single lane-dense QKV matmul: (M, E) @ (E, 3E).  The 1/sqrt(dh) scale is
    # pre-folded into the q columns of wqkv/bqkv host-side.
    qkv = jnp.dot(h2b, wqkv_ref[0], preferred_element_type=f32) + bqkv_ref[0]

    def split_heads(t):                               # (M, E) -> (B*H, N, dh)
        return jnp.transpose(t.reshape(B, N, H, dh),
                             (0, 2, 1, 3)).reshape(B * H, N, dh)

    q = split_heads(qkv[:, 0:E]).astype(bf16)
    k = split_heads(qkv[:, E:2 * E]).astype(bf16)
    v = split_heads(qkv[:, 2 * E:3 * E]).astype(bf16)

    s = jnp.einsum('gqd,gkd->gqk', q, k, preferred_element_type=f32)
    s = s - jnp.max(s, axis=-1, keepdims=True)
    p = jnp.exp(s)
    denom = jnp.sum(p, axis=-1, keepdims=True)        # (B*H, N, 1)
    o = jnp.einsum('gqk,gkd->gqd', p.astype(bf16), v,
                   preferred_element_type=f32)        # unnormalized
    # deferred softmax normalization: touches only (B*H, N, dh)
    o = o * pl.reciprocal(denom, approx=True)

    # fold heads back lane-dense: (B*H, N, dh) -> (M, E)
    o2 = jnp.transpose(o.reshape(B, H, N, dh),
                       (0, 2, 1, 3)).reshape(M, E).astype(bf16)
    # single (M,E) @ (E,E) out-projection (contraction over the full E depth)
    attn = jnp.dot(o2, wo_ref[0], preferred_element_type=f32) + bo_ref[0]

    # residual + BatchNorm1d (over all B*N rows)
    h2 = _batchnorm(h2 + attn, g1_ref[0], t1_ref[0])

    # ---- feed-forward sublayer ----
    h2b = h2.astype(bf16)
    ff = jnp.dot(h2b, w1_ref[0], preferred_element_type=f32) + b1_ref[0]
    ff = jnp.maximum(ff, 0.0).astype(bf16)
    ff = jnp.dot(ff, w2_ref[0], preferred_element_type=f32) + b2_ref[0]

    h2 = _batchnorm(h2 + ff, g2_ref[0], t2_ref[0])
    h_acc[...] = h2

    # ---- finalize on the last layer ----
    @pl.when(l == pl.num_programs(0) - 1)
    def _():
        h3 = h2.reshape(B, N, E)
        h_out_ref[...] = h3
        g_out_ref[...] = jnp.mean(h3, axis=1)


# ------------------------------ host wrapper ------------------------------- #

def _vmem_limit_bytes(M, E, F, B, N, H):
    """Shape-derived VMEM budget (resident carries + 2x streamed weights +
    transients), with slack; clamped to sane bounds."""
    f32b, bf16b = 4, 2
    resident = 2 * M * E * f32b + M * E * f32b + B * E * f32b   # h0, h_acc, h_out, g_out
    per_layer_w = (3 * E * E + E * E + 2 * E * F) * bf16b \
        + (3 * E + E + F + 5 * E) * f32b
    streamed = 2 * per_layer_w                                   # double-buffered
    transients = (M * 3 * E + 2 * B * H * N * N + 4 * M * E + M * F) * f32b
    total = resident + streamed + transients
    return int(min(max(total * 2, 16 << 20), 100 << 20))


def encoder_pallas(x, params, n_heads):
    B, N, D = x.shape
    E = params['wi'].shape[0]
    L = params['inw'].shape[0]
    F = params['w1'].shape[1]
    H = n_heads
    dh = E // H
    M = B * N
    bf16 = jnp.bfloat16
    f32 = jnp.float32
    scale = 1.0 / math.sqrt(dh)

    # ---- host-side weight re-layout (free, outside the kernel) ----
    # Lane-dense layouts: wqkv (L, E, 3E), wo (L, E, E), w1 (L, E, F),
    # w2 (L, F, E).  The 1/sqrt(dh) attention scale is folded into the q
    # columns of wqkv / bqkv.  Matmul operands pre-cast to bf16; biases / BN
    # params stay f32.
    scale_vec = jnp.concatenate([jnp.full((E,), scale, f32),
                                 jnp.ones((2 * E,), f32)])              # (3E,)
    wqkv = (jnp.transpose(params['inw'], (0, 2, 1)) * scale_vec).astype(bf16)
    bqkv = (params['inb'] * scale_vec).astype(f32)                       # (L, 1, 3E)
    wo = jnp.transpose(params['ow'], (0, 2, 1)).astype(bf16)             # (L, E, E)
    bo = params['ob'].astype(f32)                                        # (L, 1, E)
    w1t = jnp.transpose(params['w1'], (0, 2, 1)).astype(bf16)            # (L, E, F)
    b1 = params['b1'].astype(f32)                                        # (L, 1, F)
    w2t = jnp.transpose(params['w2'], (0, 2, 1)).astype(bf16)            # (L, F, E)
    b2 = params['b2'].astype(f32)                                        # (L, 1, E)
    g1, t1 = params['g1'], params['t1']
    g2, t2 = params['g2'], params['t2']

    # Input projection hoisted out of the kernel (tiny, used once).
    h0 = (x.reshape(M, D).astype(f32) @ params['wi'].T.astype(f32)
          + params['bi'].astype(f32))                                    # (M, E) f32

    inputs = [h0, wqkv, bqkv, wo, bo, w1t, b1, w2t, b2, g1, t1, g2, t2]

    grid_spec = pltpu.PrefetchScalarGridSpec(
        num_scalar_prefetch=0,
        grid=(L,),
        in_specs=[
            pl.BlockSpec((M, E), lambda l: (0, 0)),               # h0 (resident)
            pl.BlockSpec((1, E, 3 * E), lambda l: (l, 0, 0)),     # wqkv (streamed)
            pl.BlockSpec((1, 1, 3 * E), lambda l: (l, 0, 0)),     # bqkv
            pl.BlockSpec((1, E, E), lambda l: (l, 0, 0)),         # wo
            pl.BlockSpec((1, 1, E), lambda l: (l, 0, 0)),         # bo
            pl.BlockSpec((1, E, F), lambda l: (l, 0, 0)),         # w1t
            pl.BlockSpec((1, 1, F), lambda l: (l, 0, 0)),         # b1
            pl.BlockSpec((1, F, E), lambda l: (l, 0, 0)),         # w2t
            pl.BlockSpec((1, 1, E), lambda l: (l, 0, 0)),         # b2
            pl.BlockSpec((1, 1, E), lambda l: (l, 0, 0)),         # g1
            pl.BlockSpec((1, 1, E), lambda l: (l, 0, 0)),         # t1
            pl.BlockSpec((1, 1, E), lambda l: (l, 0, 0)),         # g2
            pl.BlockSpec((1, 1, E), lambda l: (l, 0, 0)),         # t2
        ],
        out_specs=(
            pl.BlockSpec((B, N, E), lambda l: (0, 0, 0)),
            pl.BlockSpec((B, E), lambda l: (0, 0)),
        ),
        scratch_shapes=[pltpu.VMEM((M, E), jnp.float32)],          # h carry
    )

    return pl.pallas_call(
        functools.partial(encoder_kernel, n_heads=n_heads),
        out_shape=(jax.ShapeDtypeStruct((B, N, E), jnp.float32),
                   jax.ShapeDtypeStruct((B, E), jnp.float32)),
        grid_spec=grid_spec,
        compiler_params=pltpu.CompilerParams(
            dimension_semantics=("arbitrary",),            # layer axis is sequential
            vmem_limit_bytes=_vmem_limit_bytes(M, E, F, B, N, H),
        ),
    )(*inputs)


# ----------------------- deterministic parameter init ---------------------- #

def init_params(key, node_dim, embed_dim, n_layers, ff_hidden):
    ks = jax.random.split(key, 14)

    def u(k, shape, fan_in):
        bound = 1.0 / math.sqrt(fan_in)
        return jax.random.uniform(k, shape, jnp.float32, -bound, bound)

    E, L, F = embed_dim, n_layers, ff_hidden
    p = {
        'wi': u(ks[0], (E, node_dim), node_dim),          # input_proj.weight
        'bi': u(ks[1], (1, E), node_dim),                 # input_proj.bias
        'inw': u(ks[2], (L, 3 * E, E), E),                # attn in_proj_weight
        'inb': u(ks[3], (L, 1, 3 * E), E),                # attn in_proj_bias
        'ow': u(ks[4], (L, E, E), E),                     # attn out_proj.weight
        'ob': u(ks[5], (L, 1, E), E),                     # attn out_proj.bias
        'w1': u(ks[6], (L, F, E), E),                     # ff first Linear
        'b1': u(ks[7], (L, 1, F), E),
        'w2': u(ks[8], (L, E, F), F),                     # ff second Linear
        'b2': u(ks[9], (L, 1, E), F),
        # BatchNorm affine params (perturbed so the affine path is exercised)
        'g1': 1.0 + 0.1 * jax.random.normal(ks[10], (L, 1, E), jnp.float32),
        't1': 0.1 * jax.random.normal(ks[11], (L, 1, E), jnp.float32),
        'g2': 1.0 + 0.1 * jax.random.normal(ks[12], (L, 1, E), jnp.float32),
        't2': 0.1 * jax.random.normal(ks[13], (L, 1, E), jnp.float32),
    }
    return p


# ----------------------------- pure-JAX reference --------------------------- #

def _bn_ref(h, g, b, eps=1e-5):
    B, N, E = h.shape
    hf = h.reshape(B * N, E)
    m = hf.mean(0)
    v = ((hf - m) ** 2).mean(0)
    return ((hf - m) / jnp.sqrt(v + eps) * g + b).reshape(B, N, E)


def encoder_ref(x, p, n_heads):
    E = p['wi'].shape[0]
    dh = E // n_heads
    B, N, _ = x.shape
    h = jnp.einsum('bnd,ed->bne', x, p['wi']) + p['bi'].reshape(E)
    for l in range(p['inw'].shape[0]):
        inw, inb = p['inw'][l], p['inb'][l].reshape(-1)
        q = h @ inw[:E].T + inb[:E]
        k = h @ inw[E:2 * E].T + inb[E:2 * E]
        v = h @ inw[2 * E:].T + inb[2 * E:]
        q = q.reshape(B, N, n_heads, dh).transpose(0, 2, 1, 3)
        k = k.reshape(B, N, n_heads, dh).transpose(0, 2, 1, 3)
        v = v.reshape(B, N, n_heads, dh).transpose(0, 2, 1, 3)
        s = jnp.einsum('bhqd,bhkd->bhqk', q, k) / math.sqrt(dh)
        a = jnp.einsum('bhqk,bhkd->bhqd', jax.nn.softmax(s, -1), v)
        a = a.transpose(0, 2, 1, 3).reshape(B, N, E)
        a = a @ p['ow'][l].T + p['ob'][l].reshape(-1)
        h = _bn_ref(h + a, p['g1'][l].reshape(-1), p['t1'][l].reshape(-1))
        ff = jnp.maximum(h @ p['w1'][l].T + p['b1'][l].reshape(-1), 0.0)
        ff = ff @ p['w2'][l].T + p['b2'][l].reshape(-1)
        h = _bn_ref(h + ff, p['g2'][l].reshape(-1), p['t2'][l].reshape(-1))
    return h, h.mean(axis=1)


# ----------------------------------- main ----------------------------------- #

if __name__ == "__main__":
    B, N, node_dim = 2, 8, 4
    embed_dim, n_heads, n_layers, ff_hidden = 32, 4, 2, 64

    key = jax.random.PRNGKey(0)
    kx, kp = jax.random.split(key)
    x = jax.random.normal(kx, (B, N, node_dim), jnp.float32)
    params = init_params(kp, node_dim, embed_dim, n_layers, ff_hidden)

    h, g = encoder_pallas(x, params, n_heads)
    h = jax.block_until_ready(h)
    g = jax.block_until_ready(g)

    assert h.shape == (B, N, embed_dim) and g.shape == (B, embed_dim)
    assert bool(jnp.isfinite(h).all()) and bool(jnp.isfinite(g).all())

    # f32 reference; kernel uses bf16 matmul operands with f32 accumulation,
    # so allow a slightly looser tolerance.
    h_ref, g_ref = encoder_ref(x, params, n_heads)
    assert np.allclose(np.asarray(h), np.asarray(h_ref), atol=5e-2, rtol=5e-2)
    assert np.allclose(np.asarray(g), np.asarray(g_ref), atol=5e-2, rtol=5e-2)

    print("KERNEL_OK")
</pallas_src>

<mosaic_0001>
module attributes {stable_mosaic.version = 11 : i64} {
  func.func @encoder_kernel(%arg0: i32, %arg1: memref<16x32xf32, #tpu.memory_space<vmem>>, %arg2: memref<1x32x96xbf16, #tpu.memory_space<vmem>>, %arg3: memref<1x1x96xf32, #tpu.memory_space<vmem>>, %arg4: memref<1x32x32xbf16, #tpu.memory_space<vmem>>, %arg5: memref<1x1x32xf32, #tpu.memory_space<vmem>>, %arg6: memref<1x32x64xbf16, #tpu.memory_space<vmem>>, %arg7: memref<1x1x64xf32, #tpu.memory_space<vmem>>, %arg8: memref<1x64x32xbf16, #tpu.memory_space<vmem>>, %arg9: memref<1x1x32xf32, #tpu.memory_space<vmem>>, %arg10: memref<1x1x32xf32, #tpu.memory_space<vmem>>, %arg11: memref<1x1x32xf32, #tpu.memory_space<vmem>>, %arg12: memref<1x1x32xf32, #tpu.memory_space<vmem>>, %arg13: memref<1x1x32xf32, #tpu.memory_space<vmem>>, %arg14: memref<2x8x32xf32, #tpu.memory_space<vmem>>, %arg15: memref<2x32xf32, #tpu.memory_space<vmem>>, %arg16: memref<16x32xf32, #tpu.memory_space<vmem>>) attributes {dimension_semantics = [#tpu.dimension_semantics<arbitrary>], iteration_bounds = array<i64: 2>, scalar_prefetch = 0 : i64, scratch_operands = 1 : i64, tpu.core_type = #tpu.core_type<tc>, window_params = [{pipeline_mode = #tpu.pipeline_mode<synchronous>, transform_indices = @transform_0, window_bounds = array<i64: 16, 32>}, {transform_indices = @transform_1, window_bounds = array<i64: 1, 32, 96>}, {transform_indices = @transform_2, window_bounds = array<i64: 1, 1, 96>}, {transform_indices = @transform_3, window_bounds = array<i64: 1, 32, 32>}, {transform_indices = @transform_4, window_bounds = array<i64: 1, 1, 32>}, {transform_indices = @transform_5, window_bounds = array<i64: 1, 32, 64>}, {transform_indices = @transform_6, window_bounds = array<i64: 1, 1, 64>}, {transform_indices = @transform_7, window_bounds = array<i64: 1, 64, 32>}, {transform_indices = @transform_8, window_bounds = array<i64: 1, 1, 32>}, {transform_indices = @transform_9, window_bounds = array<i64: 1, 1, 32>}, {transform_indices = @transform_10, window_bounds = array<i64: 1, 1, 32>}, {transform_indices = @transform_11, window_bounds = array<i64: 1, 1, 32>}, {transform_indices = @transform_12, window_bounds = array<i64: 1, 1, 32>}, {pipeline_mode = #tpu.pipeline_mode<synchronous>, transform_indices = @transform_13, window_bounds = array<i64: 2, 8, 32>}, {pipeline_mode = #tpu.pipeline_mode<synchronous>, transform_indices = @transform_14, window_bounds = array<i64: 2, 32>}]} {
    %c0_i32 = arith.constant 0 : i32
    %0 = arith.cmpi eq, %arg0, %c0_i32 : i32
    %1 = arith.extui %0 : i1 to i32
    %c0_i32_0 = arith.constant 0 : i32
    %2 = arith.cmpi ne, %1, %c0_i32_0 : i32
    scf.if %2 {
      %c0_59 = arith.constant 0 : index
      %c0_60 = arith.constant 0 : index
      %121 = vector.load %arg1[%c0_59, %c0_60] : memref<16x32xf32, #tpu.memory_space<vmem>>, vector<16x32xf32>
      %c0_61 = arith.constant 0 : index
      %c0_62 = arith.constant 0 : index
      %122 = vector.load %arg16[%c0_61, %c0_62] : memref<16x32xf32, #tpu.memory_space<vmem>>, vector<16x32xf32>
      tpu.vector_store %arg16[%c0_61, %c0_62], %121 {strides = array<i32>} : memref<16x32xf32, #tpu.memory_space<vmem>>, vector<16x32xf32>,
    } else {
    }
    %c0 = arith.constant 0 : index
    %c0_1 = arith.constant 0 : index
    %3 = vector.load %arg16[%c0, %c0_1] : memref<16x32xf32, #tpu.memory_space<vmem>>, vector<16x32xf32>
    %4 = arith.truncf %3 : vector<16x32xf32> to vector<16x32xbf16>
    %c0_2 = arith.constant 0 : index
    %c0_3 = arith.constant 0 : index
    %c0_4 = arith.constant 0 : index
    %5 = vector.load %arg2[%c0_2, %c0_3, %c0_4] : memref<1x32x96xbf16, #tpu.memory_space<vmem>>, vector<1x32x96xbf16>
    %6 = vector.shape_cast %5 : vector<1x32x96xbf16> to vector<32x96xbf16>
    %cst = arith.constant dense<0.000000e+00> : vector<16x96xf32>
    %7 = tpu.matmul %4, %6, %cst {dimension_numbers = #tpu.dot_dimension_numbers<[1], [0], [0], [1], [0, 0, 1, 1], [], []>} : vector<16x32xbf16>, vector<32x96xbf16>, vector<16x96xf32> -> vector<16x96xf32>
    %c0_5 = arith.constant 0 : index
    %c0_6 = arith.constant 0 : index
    %c0_7 = arith.constant 0 : index
    %8 = vector.load %arg3[%c0_5, %c0_6, %c0_7] : memref<1x1x96xf32, #tpu.memory_space<vmem>>, vector<1x1x96xf32>
    %9 = vector.shape_cast %8 : vector<1x1x96xf32> to vector<1x96xf32>
    %10 = vector.broadcast %9 : vector<1x96xf32> to vector<16x96xf32>
    %11 = arith.addf %7, %10 : vector<16x96xf32>
    %12 = vector.extract_strided_slice %11 {offsets = [0, 0], sizes = [16, 32], strides = [1, 1]} : vector<16x96xf32> to vector<16x32xf32>
    %13 = vector.shape_cast %12 : vector<16x32xf32> to vector<2x8x4x8xf32>
    %14 = tpu.transpose %13, [0, 2, 1, 3] : vector<2x8x4x8xf32> -> vector<2x4x8x8xf32>
    %15 = vector.shape_cast %14 : vector<2x4x8x8xf32> to vector<8x8x8xf32>
    %16 = arith.truncf %15 : vector<8x8x8xf32> to vector<8x8x8xbf16>
    %17 = vector.extract_strided_slice %11 {offsets = [0, 32], sizes = [16, 32], strides = [1, 1]} : vector<16x96xf32> to vector<16x32xf32>
    %18 = vector.shape_cast %17 : vector<16x32xf32> to vector<2x8x4x8xf32>
    %19 = tpu.transpose %18, [0, 2, 1, 3] : vector<2x8x4x8xf32> -> vector<2x4x8x8xf32>
    %20 = vector.shape_cast %19 : vector<2x4x8x8xf32> to vector<8x8x8xf32>
    %21 = arith.truncf %20 : vector<8x8x8xf32> to vector<8x8x8xbf16>
    %22 = vector.extract_strided_slice %11 {offsets = [0, 64], sizes = [16, 32], strides = [1, 1]} : vector<16x96xf32> to vector<16x32xf32>
    %23 = vector.shape_cast %22 : vector<16x32xf32> to vector<2x8x4x8xf32>
    %24 = tpu.transpose %23, [0, 2, 1, 3] : vector<2x8x4x8xf32> -> vector<2x4x8x8xf32>
    %25 = vector.shape_cast %24 : vector<2x4x8x8xf32> to vector<8x8x8xf32>
    %26 = arith.truncf %25 : vector<8x8x8xf32> to vector<8x8x8xbf16>
    "tpu.trace_start"() <{level = 10 : i32, message = "gqd,gkd->gqk"}> : () -> ()
    %cst_8 = arith.constant dense<0.000000e+00> : vector<8x8x8xf32>
    %27 = tpu.matmul %16, %21, %cst_8 {dimension_numbers = #tpu.dot_dimension_numbers<[2], [2], [1], [1], [0, 0, 0, 1, 1, 1], [0], [0]>} : vector<8x8x8xbf16>, vector<8x8x8xbf16>, vector<8x8x8xf32> -> vector<8x8x8xf32>
    "tpu.trace_stop"() : () -> ()
    %cst_9 = arith.constant dense<0xFF800000> : vector<8x8xf32>
    %28 = vector.multi_reduction <maximumf>, %27, %cst_9 [2] : vector<8x8x8xf32> to vector<8x8xf32>
    %29 = vector.shape_cast %28 : vector<8x8xf32> to vector<8x8x1xf32>
    %30 = vector.broadcast %29 : vector<8x8x1xf32> to vector<8x8x8xf32>
    %31 = arith.subf %27, %30 : vector<8x8x8xf32>
    %32 = math.exp %31 : vector<8x8x8xf32>
    %cst_10 = arith.constant dense<0.000000e+00> : vector<8x8xf32>
    %33 = vector.multi_reduction <add>, %32, %cst_10 [2] : vector<8x8x8xf32> to vector<8x8xf32>
    %34 = vector.shape_cast %33 : vector<8x8xf32> to vector<8x8x1xf32>
    %35 = arith.truncf %32 : vector<8x8x8xf32> to vector<8x8x8xbf16>
    "tpu.trace_start"() <{level = 10 : i32, message = "gqk,gkd->gqd"}> : () -> ()
    %cst_11 = arith.constant dense<0.000000e+00> : vector<8x8x8xf32>
    %36 = tpu.matmul %35, %26, %cst_11 {dimension_numbers = #tpu.dot_dimension_numbers<[2], [1], [1], [2], [0, 0, 0, 1, 1, 2], [0], [0]>} : vector<8x8x8xbf16>, vector<8x8x8xbf16>, vector<8x8x8xf32> -> vector<8x8x8xf32>
    "tpu.trace_stop"() : () -> ()
    %37 = tpu.reciprocal %34 {approx = true} : vector<8x8x1xf32> -> vector<8x8x1xf32>
    %38 = vector.broadcast %37 : vector<8x8x1xf32> to vector<8x8x8xf32>
    %39 = arith.mulf %36, %38 : vector<8x8x8xf32>
    %40 = vector.shape_cast %39 : vector<8x8x8xf32> to vector<2x4x8x8xf32>
    %41 = tpu.transpose %40, [0, 2, 1, 3] : vector<2x4x8x8xf32> -> vector<2x8x4x8xf32>
    %42 = vector.shape_cast %41 : vector<2x8x4x8xf32> to vector<16x32xf32>
    %43 = arith.truncf %42 : vector<16x32xf32> to vector<16x32xbf16>
    %c0_12 = arith.constant 0 : index
    %c0_13 = arith.constant 0 : index
    %c0_14 = arith.constant 0 : index
    %44 = vector.load %arg4[%c0_12, %c0_13, %c0_14] : memref<1x32x32xbf16, #tpu.memory_space<vmem>>, vector<1x32x32xbf16>
    %45 = vector.shape_cast %44 : vector<1x32x32xbf16> to vector<32x32xbf16>
    %cst_15 = arith.constant dense<0.000000e+00> : vector<16x32xf32>
    %46 = tpu.matmul %43, %45, %cst_15 {dimension_numbers = #tpu.dot_dimension_numbers<[1], [0], [0], [1], [0, 0, 1, 1], [], []>} : vector<16x32xbf16>, vector<32x32xbf16>, vector<16x32xf32> -> vector<16x32xf32>
    %c0_16 = arith.constant 0 : index
    %c0_17 = arith.constant 0 : index
    %c0_18 = arith.constant 0 : index
    %47 = vector.load %arg5[%c0_16, %c0_17, %c0_18] : memref<1x1x32xf32, #tpu.memory_space<vmem>>, vector<1x1x32xf32>
    %48 = vector.shape_cast %47 : vector<1x1x32xf32> to vector<1x32xf32>
    %49 = vector.broadcast %48 : vector<1x32xf32> to vector<16x32xf32>
    %50 = arith.addf %46, %49 : vector<16x32xf32>
    %51 = arith.addf %3, %50 : vector<16x32xf32>
    %c0_19 = arith.constant 0 : index
    %c0_20 = arith.constant 0 : index
    %c0_21 = arith.constant 0 : index
    %52 = vector.load %arg10[%c0_19, %c0_20, %c0_21] : memref<1x1x32xf32, #tpu.memory_space<vmem>>, vector<1x1x32xf32>
    %53 = vector.shape_cast %52 : vector<1x1x32xf32> to vector<1x32xf32>
    %c0_22 = arith.constant 0 : index
    %c0_23 = arith.constant 0 : index
    %c0_24 = arith.constant 0 : index
    %54 = vector.load %arg11[%c0_22, %c0_23, %c0_24] : memref<1x1x32xf32, #tpu.memory_space<vmem>>, vector<1x1x32xf32>
    %55 = vector.shape_cast %54 : vector<1x1x32xf32> to vector<1x32xf32>
    %cst_25 = arith.constant dense<0.000000e+00> : vector<32xf32>
    %56 = vector.multi_reduction <add>, %51, %cst_25 [0] : vector<16x32xf32> to vector<32xf32>
    %57 = vector.shape_cast %56 : vector<32xf32> to vector<1x32xf32>
    %cst_26 = arith.constant 1.600000e+01 : f32
    %58 = vector.broadcast %cst_26 : f32 to vector<1x32xf32>
    %59 = arith.divf %57, %58 : vector<1x32xf32>
    %60 = vector.broadcast %59 : vector<1x32xf32> to vector<16x32xf32>
    %61 = arith.subf %51, %60 : vector<16x32xf32>
    %62 = arith.mulf %61, %61 : vector<16x32xf32>
    %cst_27 = arith.constant dense<0.000000e+00> : vector<32xf32>
    %63 = vector.multi_reduction <add>, %62, %cst_27 [0] : vector<16x32xf32> to vector<32xf32>
    %64 = vector.shape_cast %63 : vector<32xf32> to vector<1x32xf32>
    %cst_28 = arith.constant 1.600000e+01 : f32
    %65 = vector.broadcast %cst_28 : f32 to vector<1x32xf32>
    %66 = arith.divf %64, %65 : vector<1x32xf32>
    %cst_29 = arith.constant 9.99999974E-6 : f32
    %67 = vector.broadcast %cst_29 : f32 to vector<1x32xf32>
    %68 = arith.addf %66, %67 : vector<1x32xf32>
    %69 = math.rsqrt %68 : vector<1x32xf32>
    %70 = arith.mulf %69, %53 : vector<1x32xf32>
    %71 = vector.broadcast %70 : vector<1x32xf32> to vector<16x32xf32>
    %72 = arith.mulf %61, %71 : vector<16x32xf32>
    %73 = vector.broadcast %55 : vector<1x32xf32> to vector<16x32xf32>
    %74 = arith.addf %72, %73 : vector<16x32xf32>
    %75 = arith.truncf %74 : vector<16x32xf32> to vector<16x32xbf16>
    %c0_30 = arith.constant 0 : index
    %c0_31 = arith.constant 0 : index
    %c0_32 = arith.constant 0 : index
    %76 = vector.load %arg6[%c0_30, %c0_31, %c0_32] : memref<1x32x64xbf16, #tpu.memory_space<vmem>>, vector<1x32x64xbf16>
    %77 = vector.shape_cast %76 : vector<1x32x64xbf16> to vector<32x64xbf16>
    %cst_33 = arith.constant dense<0.000000e+00> : vector<16x64xf32>
    %78 = tpu.matmul %75, %77, %cst_33 {dimension_numbers = #tpu.dot_dimension_numbers<[1], [0], [0], [1], [0, 0, 1, 1], [], []>} : vector<16x32xbf16>, vector<32x64xbf16>, vector<16x64xf32> -> vector<16x64xf32>
    %c0_34 = arith.constant 0 : index
    %c0_35 = arith.constant 0 : index
    %c0_36 = arith.constant 0 : index
    %79 = vector.load %arg7[%c0_34, %c0_35, %c0_36] : memref<1x1x64xf32, #tpu.memory_space<vmem>>, vector<1x1x64xf32>
    %80 = vector.shape_cast %79 : vector<1x1x64xf32> to vector<1x64xf32>
    %81 = vector.broadcast %80 : vector<1x64xf32> to vector<16x64xf32>
    %82 = arith.addf %78, %81 : vector<16x64xf32>
    %cst_37 = arith.constant 0.000000e+00 : f32
    %83 = vector.broadcast %cst_37 : f32 to vector<16x64xf32>
    %84 = arith.maximumf %82, %83 : vector<16x64xf32>
    %85 = arith.truncf %84 : vector<16x64xf32> to vector<16x64xbf16>
    %c0_38 = arith.constant 0 : index
    %c0_39 = arith.constant 0 : index
    %c0_40 = arith.constant 0 : index
    %86 = vector.load %arg8[%c0_38, %c0_39, %c0_40] : memref<1x64x32xbf16, #tpu.memory_space<vmem>>, vector<1x64x32xbf16>
    %87 = vector.shape_cast %86 : vector<1x64x32xbf16> to vector<64x32xbf16>
    %cst_41 = arith.constant dense<0.000000e+00> : vector<16x32xf32>
    %88 = tpu.matmul %85, %87, %cst_41 {dimension_numbers = #tpu.dot_dimension_numbers<[1], [0], [0], [1], [0, 0, 1, 1], [], []>} : vector<16x64xbf16>, vector<64x32xbf16>, vector<16x32xf32> -> vector<16x32xf32>
    %c0_42 = arith.constant 0 : index
    %c0_43 = arith.constant 0 : index
    %c0_44 = arith.constant 0 : index
    %89 = vector.load %arg9[%c0_42, %c0_43, %c0_44] : memref<1x1x32xf32, #tpu.memory_space<vmem>>, vector<1x1x32xf32>
    %90 = vector.shape_cast %89 : vector<1x1x32xf32> to vector<1x32xf32>
    %91 = vector.broadcast %90 : vector<1x32xf32> to vector<16x32xf32>
    %92 = arith.addf %88, %91 : vector<16x32xf32>
    %93 = arith.addf %74, %92 : vector<16x32xf32>
    %c0_45 = arith.constant 0 : index
    %c0_46 = arith.constant 0 : index
    %c0_47 = arith.constant 0 : index
    %94 = vector.load %arg12[%c0_45, %c0_46, %c0_47] : memref<1x1x32xf32, #tpu.memory_space<vmem>>, vector<1x1x32xf32>
    %95 = vector.shape_cast %94 : vector<1x1x32xf32> to vector<1x32xf32>
    %c0_48 = arith.constant 0 : index
    %c0_49 = arith.constant 0 : index
    %c0_50 = arith.constant 0 : index
    %96 = vector.load %arg13[%c0_48, %c0_49, %c0_50] : memref<1x1x32xf32, #tpu.memory_space<vmem>>, vector<1x1x32xf32>
    %97 = vector.shape_cast %96 : vector<1x1x32xf32> to vector<1x32xf32>
    %cst_51 = arith.constant dense<0.000000e+00> : vector<32xf32>
    %98 = vector.multi_reduction <add>, %93, %cst_51 [0] : vector<16x32xf32> to vector<32xf32>
    %99 = vector.shape_cast %98 : vector<32xf32> to vector<1x32xf32>
    %cst_52 = arith.constant 1.600000e+01 : f32
    %100 = vector.broadcast %cst_52 : f32 to vector<1x32xf32>
    %101 = arith.divf %99, %100 : vector<1x32xf32>
    %102 = vector.broadcast %101 : vector<1x32xf32> to vector<16x32xf32>
    %103 = arith.subf %93, %102 : vector<16x32xf32>
    %104 = arith.mulf %103, %103 : vector<16x32xf32>
    %cst_53 = arith.constant dense<0.000000e+00> : vector<32xf32>
    %105 = vector.multi_reduction <add>, %104, %cst_53 [0] : vector<16x32xf32> to vector<32xf32>
    %106 = vector.shape_cast %105 : vector<32xf32> to vector<1x32xf32>
    %cst_54 = arith.constant 1.600000e+01 : f32
    %107 = vector.broadcast %cst_54 : f32 to vector<1x32xf32>
    %108 = arith.divf %106, %107 : vector<1x32xf32>
    %cst_55 = arith.constant 9.99999974E-6 : f32
    %109 = vector.broadcast %cst_55 : f32 to vector<1x32xf32>
    %110 = arith.addf %108, %109 : vector<1x32xf32>
    %111 = math.rsqrt %110 : vector<1x32xf32>
    %112 = arith.mulf %111, %95 : vector<1x32xf32>
    %113 = vector.broadcast %112 : vector<1x32xf32> to vector<16x32xf32>
    %114 = arith.mulf %103, %113 : vector<16x32xf32>
    %115 = vector.broadcast %97 : vector<1x32xf32> to vector<16x32xf32>
    %116 = arith.addf %114, %115 : vector<16x32xf32>
    %c0_56 = arith.constant 0 : index
    %c0_57 = arith.constant 0 : index
    %117 = vector.load %arg16[%c0_56, %c0_57] : memref<16x32xf32, #tpu.memory_space<vmem>>, vector<16x32xf32>
    tpu.vector_store %arg16[%c0_56, %c0_57], %116 {strides = array<i32>} : memref<16x32xf32, #tpu.memory_space<vmem>>, vector<16x32xf32>,
    %c1_i32 = arith.constant 1 : i32
    %118 = arith.cmpi eq, %arg0, %c1_i32 : i32
    %119 = arith.extui %118 : i1 to i32
    %c0_i32_58 = arith.constant 0 : i32
    %120 = arith.cmpi ne, %119, %c0_i32_58 : i32
    scf.if %120 {
      %121 = vector.shape_cast %116 : vector<16x32xf32> to vector<2x8x32xf32>
      %c0_59 = arith.constant 0 : index
      %c0_60 = arith.constant 0 : index
      %c0_61 = arith.constant 0 : index
      %122 = vector.load %arg14[%c0_59, %c0_60, %c0_61] : memref<2x8x32xf32, #tpu.memory_space<vmem>>, vector<2x8x32xf32>
      tpu.vector_store %arg14[%c0_59, %c0_60, %c0_61], %121 {strides = array<i32>} : memref<2x8x32xf32, #tpu.memory_space<vmem>>, vector<2x8x32xf32>,
      %cst_62 = arith.constant dense<0.000000e+00> : vector<2x32xf32>
      %123 = vector.multi_reduction <add>, %121, %cst_62 [1] : vector<2x8x32xf32> to vector<2x32xf32>
      %cst_63 = arith.constant 8.000000e+00 : f32
      %124 = vector.broadcast %cst_63 : f32 to vector<2x32xf32>
      %125 = arith.divf %123, %124 : vector<2x32xf32>
      %c0_64 = arith.constant 0 : index
      %c0_65 = arith.constant 0 : index
      %126 = vector.load %arg15[%c0_64, %c0_65] : memref<2x32xf32, #tpu.memory_space<vmem>>, vector<2x32xf32>
      tpu.vector_store %arg15[%c0_64, %c0_65], %125 {strides = array<i32>} : memref<2x32xf32, #tpu.memory_space<vmem>>, vector<2x32xf32>,
    } else {
    }
    return
  }
  func.func @transform_0(%arg0: i32) -> (i32, i32) {
    %c0_i32 = arith.constant 0 : i32
    %c0_i32_0 = arith.constant 0 : i32
    %c0_i32_1 = arith.constant 0 : i32
    return %c0_i32, %c0_i32_0 : i32, i32
  }
  func.func @transform_1(%arg0: i32) -> (i32, i32, i32) {
    %c0_i32 = arith.constant 0 : i32
    %c0_i32_0 = arith.constant 0 : i32
    %c0_i32_1 = arith.constant 0 : i32
    return %arg0, %c0_i32, %c0_i32_0 : i32, i32, i32
  }
  func.func @transform_2(%arg0: i32) -> (i32, i32, i32) {
    %c0_i32 = arith.constant 0 : i32
    %c0_i32_0 = arith.constant 0 : i32
    %c0_i32_1 = arith.constant 0 : i32
    return %arg0, %c0_i32, %c0_i32_0 : i32, i32, i32
  }
  func.func @transform_3(%arg0: i32) -> (i32, i32, i32) {
    %c0_i32 = arith.constant 0 : i32
    %c0_i32_0 = arith.constant 0 : i32
    %c0_i32_1 = arith.constant 0 : i32
    return %arg0, %c0_i32, %c0_i32_0 : i32, i32, i32
  }
  func.func @transform_4(%arg0: i32) -> (i32, i32, i32) {
    %c0_i32 = arith.constant 0 : i32
    %c0_i32_0 = arith.constant 0 : i32
    %c0_i32_1 = arith.constant 0 : i32
    return %arg0, %c0_i32, %c0_i32_0 : i32, i32, i32
  }
  func.func @transform_5(%arg0: i32) -> (i32, i32, i32) {
    %c0_i32 = arith.constant 0 : i32
    %c0_i32_0 = arith.constant 0 : i32
    %c0_i32_1 = arith.constant 0 : i32
    return %arg0, %c0_i32, %c0_i32_0 : i32, i32, i32
  }
  func.func @transform_6(%arg0: i32) -> (i32, i32, i32) {
    %c0_i32 = arith.constant 0 : i32
    %c0_i32_0 = arith.constant 0 : i32
    %c0_i32_1 = arith.constant 0 : i32
    return %arg0, %c0_i32, %c0_i32_0 : i32, i32, i32
  }
  func.func @transform_7(%arg0: i32) -> (i32, i32, i32) {
    %c0_i32 = arith.constant 0 : i32
    %c0_i32_0 = arith.constant 0 : i32
    %c0_i32_1 = arith.constant 0 : i32
    return %arg0, %c0_i32, %c0_i32_0 : i32, i32, i32
  }
  func.func @transform_8(%arg0: i32) -> (i32, i32, i32) {
    %c0_i32 = arith.constant 0 : i32
    %c0_i32_0 = arith.constant 0 : i32
    %c0_i32_1 = arith.constant 0 : i32
    return %arg0, %c0_i32, %c0_i32_0 : i32, i32, i32
  }
  func.func @transform_9(%arg0: i32) -> (i32, i32, i32) {
    %c0_i32 = arith.constant 0 : i32
    %c0_i32_0 = arith.constant 0 : i32
    %c0_i32_1 = arith.constant 0 : i32
    return %arg0, %c0_i32, %c0_i32_0 : i32, i32, i32
  }
  func.func @transform_10(%arg0: i32) -> (i32, i32, i32) {
    %c0_i32 = arith.constant 0 : i32
    %c0_i32_0 = arith.constant 0 : i32
    %c0_i32_1 = arith.constant 0 : i32
    return %arg0, %c0_i32, %c0_i32_0 : i32, i32, i32
  }
  func.func @transform_11(%arg0: i32) -> (i32, i32, i32) {
    %c0_i32 = arith.constant 0 : i32
    %c0_i32_0 = arith.constant 0 : i32
    %c0_i32_1 = arith.constant 0 : i32
    return %arg0, %c0_i32, %c0_i32_0 : i32, i32, i32
  }
  func.func @transform_12(%arg0: i32) -> (i32, i32, i32) {
    %c0_i32 = arith.constant 0 : i32
    %c0_i32_0 = arith.constant 0 : i32
    %c0_i32_1 = arith.constant 0 : i32
    return %arg0, %c0_i32, %c0_i32_0 : i32, i32, i32
  }
  func.func @transform_13(%arg0: i32) -> (i32, i32, i32) {
    %c0_i32 = arith.constant 0 : i32
    %c0_i32_0 = arith.constant 0 : i32
    %c0_i32_1 = arith.constant 0 : i32
    %c0_i32_2 = arith.constant 0 : i32
    return %c0_i32, %c0_i32_0, %c0_i32_1 : i32, i32, i32
  }
  func.func @transform_14(%arg0: i32) -> (i32, i32) {
    %c0_i32 = arith.constant 0 : i32
    %c0_i32_0 = arith.constant 0 : i32
    %c0_i32_1 = arith.constant 0 : i32
    return %c0_i32, %c0_i32_0 : i32, i32
  }
}

</mosaic_0001>

<bundles_post_ra>
// kernel: tpu_custom_call.1
= control target key start
LH: loop header
LB: loop body
LE: loop exit
PB: predicated region body
PF: predicated region fallthrough
CT: control target
= control target key end

     0   :  { %s4490_s0 = inlined_call_operand.hbm [shape: f32[16,32], index: 0, kind: input, shape index: {}]   ;;  %s4491_s1 = inlined_call_operand.vmem [shape: bf16[2,32,96], index: 1, kind: input, shape index: {}]   ;;  %s4492_s2 = inlined_call_operand.vmem [shape: f32[2,1,96], index: 2, kind: input, shape index: {}]   ;;  %s4493_s3 = inlined_call_operand.vmem [shape: bf16[2,32,32], index: 3, kind: input, shape index: {}]   ;;  %s4494_s4 = inlined_call_operand.vmem [shape: f32[2,1,32], index: 4, kind: input, shape index: {}]   ;;  %s4495_s5 = inlined_call_operand.vmem [shape: bf16[2,32,64], index: 5, kind: input, shape index: {}]   ;;  %s4496_s6 = inlined_call_operand.vmem [shape: f32[2,1,64], index: 6, kind: input, shape index: {}]   ;;  %s4497_s7 = inlined_call_operand.vmem [shape: bf16[2,64,32], index: 7, kind: input, shape index: {}]   ;;  %s4498_s8 = inlined_call_operand.vmem [shape: f32[2,1,32], index: 8, kind: input, shape index: {}]   ;;  %s4499_s9 = inlined_call_operand.vmem [shape: f32[2,1,32], index: 9, kind: input, shape index: {}]   ;;  %s4500_s10 = inlined_call_operand.vmem [shape: f32[2,1,32], index: 10, kind: input, shape index: {}]   ;;  %s4501_s11 = inlined_call_operand.vmem [shape: f32[2,1,32], index: 11, kind: input, shape index: {}]   ;;  %s4502_s12 = inlined_call_operand.vmem [shape: f32[2,1,32], index: 12, kind: input, shape index: {}]   ;;  %s4503_s13 = inlined_call_operand.hbm [shape: f32[2,8,32], index: 13, kind: output, shape index: {0}]   ;;  %s4504_s14 = inlined_call_operand.hbm [shape: f32[2,32], index: 14, kind: output, shape index: {1}]  }
   0x1   :  { %4510 = sst [smem:[#allocation13_spill]] %s4490_s0 }
   0x2   :  { %4511 = sst [smem:[#allocation14_spill]] %s4491_s1 }
   0x3   :  { %4512 = sst [smem:[#allocation15_spill]] %s4493_s3 }
   0x4   :  { %4513 = sst [smem:[#allocation16_spill]] %s4495_s5 }
   0x5   :  { %4514 = sst [smem:[#allocation17_spill]] %s4503_s13 }
   0x6   :  { %4515 = sst [smem:[#allocation18_spill]] %s4504_s14 }
   0x7   :  { %20 = vsyncpa [#allocation4], 0 }
   0x8   :  { %21 = vsyncpa [#allocation5], 0 }
   0x9   :  { %22 = vsyncpa [#allocation8], 0  ;;  %s3863_s29 = smov 0  }
   0xa LB: > { %4516 = sst [smem:[#allocation12_spill]] %s3768_s29  ;;  %s3869_s30 = sadd.s32 4294967295, %s3768_s29   ;;  %s3768_s29 = sphi %s3863_s29, %s28_s29  }
   0xb   : > { %p3304_p0 = scmp.ge.s32.totalorder %s3768_s29, 1  ;;  %p408_p1 = scmp.lt.s32.totalorder %s3768_s29, 3 }
   0xc   : > { %s3770_s15 = smov [#allocation3]   ;;  %p4505_p4 = scmp.eq.s32.totalorder %s3869_s30, 0 }
   0xd   : > { %s420_s16 = sshll.u32 %s3770_s15, 4  ;;  %p3874_p3 = pnand %p3304_p0, %p408_p1  ;;  %s421_s16 = int_to_ptr.vmem [resolvable:$true] %s420_s16 }
   0xe   : > { %s4519_s0 = sld [smem:[#allocation13_spill]] }
   0xf   : > { %s4517_s17 = scalar_select %p3874_p3, 1, 0 }
  0x10   : > { %p3571_p5 = pneg %p3874_p3 }
  0x12   : > { %p3883_p6 = pnand %p4505_p4, %p3571_p5 }
  0x14   : > { %s3670_s21 = scalar_lea.hbm %s4519_s0, 256  ;;  %p3672_p8 = pneg %p3883_p6 }
  0x15   : > { %p3671_p7 = scmp.ne.s32.totalorder %s4519_s0, %s3670_s21  ;;  %p3677_p11 = scmp.lt.u32.totalorder %s3670_s21, %s4519_s0 }
  0x17   : > { %p3673_p9 = pnand %p3672_p8, %p3671_p7 }
  0x19   : > { %p3674_p10 = pneg %p3673_p9 }
  0x1b   : > { %p3679_p12 = pnand %p3677_p11, %p3674_p10 }
  0x1d   : > { %3682 = shalt.err (!%p3679_p12)
}
  0x1e   : > { %s3683_s26 = scalar_lea.vmem %s421_s16, 256  ;;  %p3691_p5 = scmp.lt.s32.totalorder %s421_s16, %s421_s16 }
  0x1f   : > { %p3684_p13 = scmp.ne.s32.totalorder %s421_s16, %s3683_s26  ;;  %p3692_p2 = scmp.lt.s32.totalorder %s3683_s26, %s3683_s26 }
  0x21   : > { %p3686_p0 = pnand %p3684_p13, %p3672_p8  ;;  %p3693_p4 = por %p3692_p2, %p3691_p5 }
  0x23   : > { %p3687_p1 = pneg %p3686_p0 }
  0x25   : > { %p3694_p3 = pnand %p3693_p4, %p3687_p1 }
  0x27   : > { %3697 = shalt.err (!%p3694_p3)
}
  0x28   : > { %s3771_s27 = smov 128   ;;  %s3772_s28 = smov 8  }
  0x29   : > { %3574 = dma.hbm_to_vmem [thread:$0]  (!%p3883_p6), %s4519_s0, 256, %s421_s16, [#allocation4], %s3771_s27, %s3771_s27, %s3772_s28  }
  0x2a   : > { %p4520_p7 = scmp.ne.s32.totalorder %s4517_s17, 0 }
  0x2b   : > { %p4521_p9 = scmp.eq.s32.totalorder (!%p4520_p7), %s3869_s30, 0 }
  0x2c   : > { %516 = sbr.rel (%p4520_p7) target bundleno = 2214 (0x8a6), region = 72 }
  0x33   : > { %3755 = dma.done.wait (%p4521_p9), [#allocation4], 256   ;;  %p4522_p8 = pmov %p4521_p9 }
  0x34   : > { %p596_p2 = scmp.lt.s32.totalorder %s3869_s30, 1  ;;  %s4523_s1 = sld [smem:[#allocation14_spill]] }
  0x35   : > { %3757 = vsyncadd (%p4522_p8), [#allocation4], 4294967040  ;;  %s4524_s3 = sld [smem:[#allocation15_spill]]  ;;  %s4525_s5 = sld [smem:[#allocation16_spill]] }
  0x36   : > { %s3911_s20 = scalar_select %p596_p2, %s3869_s30, 1 }
  0x37   : > { %p4526_p3 = scmp.ne.s32.totalorder %s3869_s30, 0 }
  0x38   : > { %s3377_s16 = sshll.u32 %s3911_s20, 4  ;;  %s3380_s22 = sshll.u32 %s3911_s20, 5  ;;  %v645_v0 = vld [vmem:[#allocation3] sm:$0xff] (!%p4526_p3)  ;;  %vm647_vm0 = vcmask (!%p4526_p3), 261120   ;;  %v646_v1 = vld [vmem:[#allocation3 + $0x8] sm:$0xff] (!%p4526_p3) }
  0x39   : > { %s3943_s25 = scalar_lea.vmem %s4497_s7, %s3380_s22  ;;  %s627_s28 = scalar_lea.vmem %s4498_s8, %s3911_s20  ;;  %648 = vst.msk [vmem:[#allocation2] sm:$0xff] (!%p4526_p3), %vm647_vm0, %v645_v0  ;;  %649 = vst.msk [vmem:[#allocation2 + $0x8] sm:$0xff] (!%p4526_p3), %vm647_vm0, %v646_v1 }
  0x3a   : > { %s600_s24 = scalar_lea.vmem %s4523_s1, %s3377_s16  ;;  %s630_s0 = scalar_lea.vmem %s4499_s9, %s3911_s20 }
  0x3b   : > { %s3924_s27 = scalar_lea.vmem %s4524_s3, %s3377_s16  ;;  %s3933_s14 = scalar_lea.vmem %s4525_s5, %s3377_s16 }
  0x3c   : > { %s633_s5 = scalar_lea.vmem %s4500_s10, %s3911_s20  ;;  %s636_s21 = scalar_lea.vmem %s4501_s11, %s3911_s20 }
  0x3d   : > { %s639_s22 = scalar_lea.vmem %s4502_s12, %s3911_s20  ;;  %644 = sbr.rel (%p4526_p3) target bundleno = 68 (0x44), region = 80 }
  0x44 PF: > { %v3622_v2 = vld [vmem:[%s600_s24] sm:$0xff]   ;;  %v3773_v3 = vmov 0.0   ;;  %v3623_v4 = vld [vmem:[%s600_s24 + $0x8] sm:$0xff]   ;;  %vm3774_vm1 = vmmov 0   ;;  %vm676_vm2 = vcmask 261120   ;;  %s4527_s24 = scalar_lea.vmem %s4492_s2, %s3911_s20  ;;  %s3775_s19 = smov 104   ;;  %v746_v17 = vlaneseq }
  0x45   : > { %3427 = vmatprep.subr.bf16.mxu0 %v3773_v3  ;;  %3435 = vmatprep.subr.bf16.mxu1 %v3773_v3  ;;  %v650_v5 = vld [vmem:[#allocation2] sm:$0xff]  ;;  %v651_v6 = vld [vmem:[#allocation2 + $0x8] sm:$0xff]  ;;  %s3776_s23 = smov 120   ;;  %s3777_s26 = smov 112   ;;  %v3779_v15 = vmov 1983009808  }
  0x46   : > { %3428 = vmatpush3.bf16.msra.mxu0 %v3622_v2  ;;  %3431 = vmatprep.mubr.msk.bf16.mxu0 %vm3774_vm1, %v3773_v3  ;;  %v652_v7 = vpack.c.bf16 %v651_v6, %v650_v5  ;;  %v3318_v8 = vld [vmem:[%s4527_s24] ss:$0 sm:$0xff]  ;;  %s3778_s15 = smov 96   ;;  %v744_v16 = vunpack.c.l.s4 %v3779_v15  ;;  %v3780_v18 = vmov 1934713408   ;;  %v3989_v21 = vshrl.u32 %v746_v17, 7  ;;  %s4528_s3 = scalar_lea.vmem %s4494_s4, %s3911_s20 }
  0x47   : > { %3429 = vmatprep.subr.bf16.mxu0 %v3773_v3  ;;  %3437 = vmatprep.mubr.msk.bf16.mxu1 %vm3774_vm1, %v3773_v3  ;;  %v776_v19 = vunpack.c.l.s4 %v3780_v18  ;;  %s3781_s29 = smov 64   ;;  %vm1629_vm3 = vcmask 64512   ;;  %vm2081_vm4 = vcmask 1043456   ;;  %s3783_s16 = smov 8   ;;  %vm2761_vm5 = vcmask 130048  }
  0x48   : > { %v745_v20 = vunpack.c.0.s8 %v744_v16  ;;  %s3784_s17 = smov 24   ;;  %vm2764_vm6 = vcmask 195584   ;;  %vm2991_vm7 = vcmask 523264   ;;  %p3370_p4 = scmp.ne.s32.totalorder %s3869_s30, 1 }
  0x49   : > { %v777_v26 = vunpack.c.0.s8 %v776_v19  ;;  %vm3108_vm8 = vcmask (!%p3370_p4), 1041409   ;;  %vm3111_vm9 = vcmask (!%p3370_p4), 254976  }
  0x4a   : > { %3430 = vmatpush3.bf16.msra.mxu0 %v3623_v4  ;;  %v3993_v27 = vsub.s32 %v745_v20, %v3989_v21 }
  0x4b   : > { %3441 = vmatprep.subr.bf16.mxu0 %v3773_v3  ;;  %v3998_v31 = vsub.s32 %v777_v26, %v3989_v21 }
  0x4d   : > { %3432 = vmatmul.mubr.msk.bf16.vlgmr.msra.gmra.mrb[0].mxu0 %vm676_vm2, %v652_v7 }
  0x4e   : > { %3443 = vmatprep.mubr.msk.bf16.mxu0 %vm3774_vm1, %v3773_v3 }
 0x120   : > { %v714_v9 = vpop.f32.mrb[0].mxu0 }
 0x121   : > { %v715_v10 = vadd.f32 %v3318_v8, %v714_v9  ;;  %v3433_v11 = vpop.f32.mrb[1].mxu0 }
 0x122   : > { %v717_v12 = vpop.f32.mrb[2].mxu0 }
 0x123   : > { %735 = vrot.lane.b32.xlu1 %v715_v10, %s3775_s19  ;;  %723 = vrot.lane.b32.xlu0 %v715_v10, %s3776_s23  ;;  %v3434_v13 = vpop.f32.mrb[3].mxu0  ;;  %v3983_v14 = vadd.f32 %v3318_v8, %v717_v12 }
 0x127   : > { %729 = vrot.lane.b32.xlu0 %v715_v10, %s3777_s26  ;;  %725 = vrot.lane.b32.xlu1 %v3983_v14, %s3776_s23 }
 0x12b   : > { %731 = vrot.lane.b32.xlu0 %v3983_v14, %s3777_s26  ;;  %737 = vrot.lane.b32.xlu1 %v3983_v14, %s3775_s19  ;;  %s4529_s26 = scalar_lea.vmem %s4496_s6, %s3911_s20 }
 0x12f   : > { %1021 = vrot.lane.b32.xlu0 %v715_v10, %s3778_s15 }
 0x195   : > { %v736_v22 = vpop.permute.xlu1 %735  ;;  %v724_v23 = vpop.permute.xlu0 %723 }
 0x196   : > { %v757_v24 = vcombine.low %v724_v23, %v736_v22  ;;  %v758_v25 = vcombine.high %v724_v23, %v736_v22  ;;  %1025 = vrot.lane.b32.xlu1 %v724_v23, %s3778_s15 }
 0x198   : > { %v765_v32 = vrot.slane %v757_v24, %v3993_v27  ;;  %v772_v33 = vrot.slane %v758_v25, %v3993_v27 }
 0x199   : > { %v730_v28 = vpop.permute.xlu0 %729  ;;  %v4004_v36 = vpop.permute.xlu1 %725 }
 0x19a   : > { %v741_v29 = vcombine.low %v715_v10, %v730_v28  ;;  %v742_v30 = vcombine.high %v715_v10, %v730_v28  ;;  %1029 = vrot.lane.b32.xlu0 %v730_v28, %s3778_s15  ;;  %1033 = vrot.lane.b32.xlu1 %v736_v22, %s3778_s15 }
 0x19c   : > { %v749_v34 = vrot.slane %v741_v29, %v3993_v27  ;;  %v756_v35 = vrot.slane %v742_v30, %v3993_v27 }
 0x19d   : > { %v4014_v45 = vpop.permute.xlu0 %731  ;;  %v4016_v50 = vpop.permute.xlu1 %737 }
 0x19e   : > { %v773_v37 = vcombine.low %v749_v34, %v765_v32  ;;  %v774_v38 = vcombine.high %v749_v34, %v765_v32  ;;  %v789_v39 = vcombine.low %v756_v35, %v772_v33  ;;  %v790_v40 = vcombine.high %v756_v35, %v772_v33  ;;  %1023 = vrot.lane.b32.xlu0 %v3983_v14, %s3778_s15 }
 0x19f   : > { %1027 = vrot.lane.b32.xlu1 %v4004_v36, %s3778_s15  ;;  %v809_v4 = vcombine.low %v3983_v14, %v4014_v45  ;;  %v825_v5 = vcombine.low %v4004_v36, %v4016_v50  ;;  %v810_v6 = vcombine.high %v3983_v14, %v4014_v45  ;;  %v826_v8 = vcombine.high %v4004_v36, %v4016_v50 }
 0x1a0   : > { %v781_v41 = vrot.slane %v773_v37, %v3998_v31  ;;  %v788_v42 = vrot.slane %v774_v38, %v3998_v31  ;;  %v797_v43 = vrot.slane %v789_v39, %v3998_v31  ;;  %v804_v44 = vrot.slane %v790_v40, %v3998_v31 }
 0x1a1   : > { %v817_v7 = vrot.slane %v809_v4, %v3993_v27  ;;  %v833_v9 = vrot.slane %v825_v5, %v3993_v27  ;;  %v824_v12 = vrot.slane %v810_v6, %v3993_v27  ;;  %v840_v13 = vrot.slane %v826_v8, %v3993_v27 }
 0x1a2   : > { %v877_v46 = vcombine.low %v781_v41, %v788_v42  ;;  %v3322_v47 = vcombine.high %v781_v41, %v788_v42  ;;  %v893_v48 = vcombine.low %v797_v43, %v804_v44  ;;  %v3323_v49 = vcombine.high %v797_v43, %v804_v44  ;;  %1031 = vrot.lane.b32.xlu0 %v4014_v45, %s3778_s15 }
 0x1a3   : > { %1035 = vrot.lane.b32.xlu1 %v4016_v50, %s3778_s15  ;;  %v841_v15 = vcombine.low %v817_v7, %v833_v9  ;;  %v842_v16 = vcombine.high %v817_v7, %v833_v9  ;;  %v857_v30 = vcombine.low %v824_v12, %v840_v13  ;;  %v858_v32 = vcombine.high %v824_v12, %v840_v13 }
 0x1a4   : > { %v884_v51 = vrot.slane %v877_v46, %v3993_v27  ;;  %v892_v52 = vrot.slane %v3322_v47, %v3993_v27  ;;  %v900_v53 = vrot.slane %v893_v48, %v3993_v27  ;;  %v908_v54 = vrot.slane %v3323_v49, %v3993_v27 }
 0x1a5   : > { %v4064_v29 = vrot.slane %v842_v16, %v3998_v31  ;;  %v4071_v44 = vrot.slane %v857_v30, %v3998_v31  ;;  %v4074_v46 = vrot.slane %v858_v32, %v3998_v31 }
 0x1a6   : > { %1325 = vrot.lane.b32.xlu0 %v715_v10, %s3781_s29  ;;  %v909_v55 = vcombine.low %v884_v51, %v892_v52  ;;  %v910_v56 = vcombine.high %v884_v51, %v892_v52  ;;  %v925_v58 = vcombine.low %v900_v53, %v908_v54  ;;  %v926_v59 = vcombine.high %v900_v53, %v908_v54  ;;  %v1022_v10 = vpop.permute.xlu0 %1021 }
 0x1a7   : > { %1329 = vrot.lane.b32.xlu1 %v724_v23, %s3781_s29 }
 0x1a8   : > { %v917_v57 = vrot.slane %v909_v55, %v3998_v31  ;;  %v924_v60 = vrot.slane %v910_v56, %v3998_v31  ;;  %v933_v61 = vrot.slane %v925_v58, %v3998_v31  ;;  %v940_v62 = vrot.slane %v926_v59, %v3998_v31 }
 0x1aa   : > { %1333 = vrot.lane.b32.xlu0 %v730_v28, %s3781_s29  ;;  %v4034_v63 = vcombine.low %v917_v57, %v933_v61  ;;  %v4036_v0 = vcombine.high %v917_v57, %v933_v61  ;;  %v4038_v1 = vcombine.low %v924_v60, %v940_v62  ;;  %v4040_v2 = vcombine.high %v924_v60, %v940_v62 }
 0x1ab   : > { %1337 = vrot.lane.b32.xlu1 %v736_v22, %s3781_s29  ;;  %v4061_v28 = vrot.slane %v841_v15, %v3998_v31 }
 0x1ad   : > { %v945_v47 = vcombine.low %v4061_v28, %v4064_v29 }
 0x1af   : > { %1327 = vrot.lane.b32.xlu1 %v3983_v14, %s3781_s29 }
 0x208   : > { %v1026_v11 = vpop.permute.xlu1 %1025 }
 0x20c   : > { %v1030_v17 = vpop.permute.xlu0 %1029  ;;  %v1034_v18 = vpop.permute.xlu1 %1033 }
 0x20d   : > { %v1045_v19 = vcombine.low %v1022_v10, %v1030_v17  ;;  %v1046_v20 = vcombine.high %v1022_v10, %v1030_v17  ;;  %v1061_v14 = vcombine.low %v1026_v11, %v1034_v18  ;;  %v1062_v22 = vcombine.high %v1026_v11, %v1034_v18 }
 0x20f   : > { %v1053_v23 = vrot.slane %v1045_v19, %v3993_v27  ;;  %v1060_v24 = vrot.slane %v1046_v20, %v3993_v27  ;;  %v1069_v25 = vrot.slane %v1061_v14, %v3993_v27  ;;  %v1076_v26 = vrot.slane %v1062_v22, %v3993_v27 }
 0x210   : > { %v1024_v33 = vpop.permute.xlu0 %1023 }
 0x211   : > { %v1077_v34 = vcombine.low %v1053_v23, %v1069_v25  ;;  %v1078_v35 = vcombine.high %v1053_v23, %v1069_v25  ;;  %v1093_v37 = vcombine.low %v1060_v24, %v1076_v26  ;;  %v1094_v38 = vcombine.high %v1060_v24, %v1076_v26  ;;  %v1028_v39 = vpop.permute.xlu1 %1027 }
 0x213   : > { %v1085_v40 = vrot.slane %v1077_v34, %v3998_v31  ;;  %v1092_v41 = vrot.slane %v1078_v35, %v3998_v31  ;;  %v1101_v42 = vrot.slane %v1093_v37, %v3998_v31  ;;  %v1108_v43 = vrot.slane %v1094_v38, %v3998_v31 }
 0x214   : > { %v1032_v48 = vpop.permute.xlu0 %1031 }
 0x215   : > { %v1181_v49 = vcombine.low %v1085_v40, %v1092_v41  ;;  %v3326_v51 = vcombine.high %v1085_v40, %v1092_v41  ;;  %v1197_v52 = vcombine.low %v1101_v42, %v1108_v43  ;;  %v3327_v53 = vcombine.high %v1101_v42, %v1108_v43  ;;  %v1036_v54 = vpop.permute.xlu1 %1035 }
 0x216   : > { %v1113_v55 = vcombine.low %v1024_v33, %v1032_v48  ;;  %v1114_v56 = vcombine.high %v1024_v33, %v1032_v48  ;;  %v1129_v57 = vcombine.low %v1028_v39, %v1036_v54  ;;  %v1130_v58 = vcombine.high %v1028_v39, %v1036_v54 }
 0x217   : > { %v1188_v59 = vrot.slane %v1181_v49, %v3993_v27  ;;  %v1196_v60 = vrot.slane %v3326_v51, %v3993_v27  ;;  %v1204_v61 = vrot.slane %v1197_v52, %v3993_v27  ;;  %v1212_v62 = vrot.slane %v3327_v53, %v3993_v27 }
 0x218   : > { %v1121_v4 = vrot.slane %v1113_v55, %v3993_v27  ;;  %v1128_v5 = vrot.slane %v1114_v56, %v3993_v27  ;;  %v1137_v6 = vrot.slane %v1129_v57, %v3993_v27  ;;  %v1144_v7 = vrot.slane %v1130_v58, %v3993_v27  ;;  %v1326_v8 = vpop.permute.xlu0 %1325 }
 0x219   : > { %v1330_v9 = vpop.permute.xlu1 %1329  ;;  %v1213_v10 = vcombine.low %v1188_v59, %v1196_v60  ;;  %v1229_v11 = vcombine.low %v1204_v61, %v1212_v62  ;;  %v1214_v12 = vcombine.high %v1188_v59, %v1196_v60  ;;  %v1230_v13 = vcombine.high %v1204_v61, %v1212_v62 }
 0x21a   : > { %v1145_v15 = vcombine.low %v1121_v4, %v1137_v6  ;;  %v1146_v16 = vcombine.high %v1121_v4, %v1137_v6  ;;  %v1161_v17 = vcombine.low %v1128_v5, %v1144_v7  ;;  %v1162_v18 = vcombine.high %v1128_v5, %v1144_v7 }
 0x21b   : > { %v1221_v19 = vrot.slane %v1213_v10, %v3998_v31  ;;  %v1237_v20 = vrot.slane %v1229_v11, %v3998_v31  ;;  %v1228_v14 = vrot.slane %v1214_v12, %v3998_v31  ;;  %v1244_v22 = vrot.slane %v1230_v13, %v3998_v31 }
 0x21c   : > { %v1153_v23 = vrot.slane %v1145_v15, %v3998_v31  ;;  %v1160_v24 = vrot.slane %v1146_v16, %v3998_v31  ;;  %v1169_v25 = vrot.slane %v1161_v17, %v3998_v31  ;;  %v1176_v26 = vrot.slane %v1162_v18, %v3998_v31  ;;  %v1334_v30 = vpop.permute.xlu0 %1333 }
 0x21d   : > { %v1349_v32 = vcombine.low %v1326_v8, %v1334_v30  ;;  %v1350_v33 = vcombine.high %v1326_v8, %v1334_v30  ;;  %v1338_v34 = vpop.permute.xlu1 %1337  ;;  %v1245_v35 = vcombine.low %v1221_v19, %v1237_v20  ;;  %v1246_v37 = vcombine.high %v1221_v19, %v1237_v20 }
 0x21e   : > { %v1249_v38 = vcombine.low %v1153_v23, %v1160_v24  ;;  %v3328_v39 = vcombine.high %v1153_v23, %v1160_v24  ;;  %v1265_v40 = vcombine.low %v1169_v25, %v1176_v26  ;;  %v3329_v41 = vcombine.high %v1169_v25, %v1176_v26 }
 0x21f   : > { %v1357_v42 = vrot.slane %v1349_v32, %v3993_v27  ;;  %v1364_v43 = vrot.slane %v1350_v33, %v3993_v27  ;;  %v1365_v48 = vcombine.low %v1330_v9, %v1338_v34  ;;  %v1366_v49 = vcombine.high %v1330_v9, %v1338_v34 }
 0x220   : > { %v4097_v51 = vrot.slane %v1249_v38, %v3993_v27  ;;  %v4100_v52 = vrot.slane %v3328_v39, %v3993_v27  ;;  %v4103_v53 = vrot.slane %v1265_v40, %v3993_v27  ;;  %v4106_v54 = vrot.slane %v3329_v41, %v3993_v27 }
 0x221   : > { %v1373_v55 = vrot.slane %v1365_v48, %v3993_v27  ;;  %v1380_v56 = vrot.slane %v1366_v49, %v3993_v27  ;;  %v1317_v57 = vpack.c.bf16 %v1245_v35, %v1245_v35  ;;  %v1318_v58 = vpack.c.bf16 %v1246_v37, %v1246_v37 }
 0x222   : > { %v3324_v59 = vcombine.high %v4061_v28, %v4064_v29  ;;  %v961_v60 = vcombine.low %v4071_v44, %v4074_v46  ;;  %v1281_v61 = vcombine.low %v4097_v51, %v4100_v52  ;;  %v1297_v62 = vcombine.low %v4103_v53, %v4106_v54 }
 0x223   : > { %v1381_v4 = vcombine.low %v1357_v42, %v1373_v55  ;;  %v1382_v5 = vcombine.high %v1357_v42, %v1373_v55  ;;  %v1397_v6 = vcombine.low %v1364_v43, %v1380_v56  ;;  %v1398_v7 = vcombine.high %v1364_v43, %v1380_v56 }
 0x224   : > { %v1634_v8 = vsel %vm1629_vm3, %v1317_v57, 0  ;;  %v1680_v9 = vsel %vm1629_vm3, %v1318_v58, 0  ;;  %v1247_v10 = vcombine.low %v1228_v14, %v1244_v22  ;;  %v1248_v11 = vcombine.high %v1228_v14, %v1244_v22 }
 0x225   : > { %v1389_v12 = vrot.slane %v1381_v4, %v3998_v31  ;;  %v1396_v13 = vrot.slane %v1382_v5, %v3998_v31  ;;  %v1405_v15 = vrot.slane %v1397_v6, %v3998_v31  ;;  %v1412_v16 = vrot.slane %v1398_v7, %v3998_v31  ;;  %3436 = vmatpush3.bf16.xpose.msra.mxu1 %v1634_v8 }
 0x226   : > { %v3325_v17 = vcombine.high %v4071_v44, %v4074_v46  ;;  %3442 = vmatpush3.bf16.xpose.msra.mxu0 %v1680_v9  ;;  %3447 = vmatprep.subr.bf16.mxu1 %v3773_v3  ;;  %v1289_v18 = vrot.slane %v1281_v61, %v3998_v31  ;;  %v1305_v19 = vrot.slane %v1297_v62, %v3998_v31 }
 0x227   : > { %v1485_v20 = vcombine.low %v1389_v12, %v1396_v13  ;;  %v3330_v14 = vcombine.high %v1389_v12, %v1396_v13  ;;  %v1501_v22 = vcombine.low %v1405_v15, %v1412_v16  ;;  %v3331_v23 = vcombine.high %v1405_v15, %v1412_v16  ;;  %3453 = vmatprep.subr.bf16.mxu0 %v3773_v3 }
 0x228   : > { %v4134_v24 = vrot.slane %v945_v47, %v3993_v27  ;;  %v1319_v44 = vpack.c.bf16 %v1247_v10, %v1247_v10  ;;  %v1320_v46 = vpack.c.bf16 %v1248_v11, %v1248_v11  ;;  %v960_v33 = vrot.slane %v3324_v59, %v3993_v27 }
 0x229   : > { %v1492_v25 = vrot.slane %v1485_v20, %v3993_v27  ;;  %v1500_v26 = vrot.slane %v3330_v14, %v3993_v27  ;;  %v1508_v30 = vrot.slane %v1501_v22, %v3993_v27  ;;  %v1516_v32 = vrot.slane %v3331_v23, %v3993_v27 }
 0x22a   : > { %v968_v34 = vrot.slane %v961_v60, %v3993_v27  ;;  %v976_v35 = vrot.slane %v3325_v17, %v3993_v27  ;;  %v1013_v28 = vpack.c.bf16 %v4034_v63, %v4034_v63  ;;  %v1014_v29 = vpack.c.bf16 %v4036_v0, %v4036_v0 }
 0x22b   : > { %v1313_v47 = vcombine.low %v1289_v18, %v1305_v19  ;;  %v1518_v37 = vcombine.high %v1492_v25, %v1500_v26  ;;  %v1534_v38 = vcombine.high %v1508_v30, %v1516_v32  ;;  %v1726_v39 = vsel %vm1629_vm3, %v1319_v44, 0 }
 0x22c   : > { %3438 = vmatmul.mubr.msk.bf16.vlgmr.msra.gmra.mrb[0].mxu1 %vm1629_vm3, %v1013_v28  ;;  %v1282_v40 = vcombine.high %v4097_v51, %v4100_v52  ;;  %v1298_v41 = vcombine.high %v4103_v53, %v4106_v54  ;;  %v1772_v63 = vsel %vm1629_vm3, %v1320_v46, 0  ;;  %v1314_v42 = vcombine.high %v1289_v18, %v1305_v19 }
 0x22d   : > { %3444 = vmatmul.mubr.msk.bf16.vlgmr.msra.gmra.mrb[4].mxu0 %vm1629_vm3, %v1014_v29  ;;  %3448 = vmatpush3.bf16.xpose.msra.mxu1 %v1726_v39  ;;  %v1532_v0 = vrot.slane %v1518_v37, %v3998_v31  ;;  %v977_v43 = vcombine.low %v4134_v24, %v960_v33  ;;  %v993_v48 = vcombine.low %v968_v34, %v976_v35 }
 0x22e   : > { %3454 = vmatpush3.bf16.xpose.msra.mxu0 %v1772_v63  ;;  %3449 = vmatprep.mubr.msk.bf16.mxu1 %vm3774_vm1, %v3773_v3  ;;  %v1548_v49 = vrot.slane %v1534_v38, %v3998_v31  ;;  %v1321_v51 = vpack.c.bf16 %v1313_v47, %v1313_v47  ;;  %v1296_v52 = vrot.slane %v1282_v40, %v3998_v31 }
 0x22f   : > { %3455 = vmatprep.mubr.msk.bf16.mxu0 %vm3774_vm1, %v3773_v3  ;;  %3459 = vmatprep.subr.bf16.mxu1 %v3773_v3  ;;  %v1312_v53 = vrot.slane %v1298_v41, %v3998_v31  ;;  %v1322_v56 = vpack.c.bf16 %v1314_v42, %v1314_v42  ;;  %v1015_v57 = vpack.c.bf16 %v4038_v1, %v4038_v1 }
 0x230   : > { %3465 = vmatprep.subr.bf16.mxu0 %v3773_v3  ;;  %v4166_v54 = vcombine.low %v1532_v0, %v1548_v49  ;;  %v4168_v55 = vcombine.high %v1532_v0, %v1548_v49  ;;  %v985_v58 = vrot.slane %v977_v43, %v3998_v31  ;;  %v1001_v59 = vrot.slane %v993_v48, %v3998_v31 }
 0x231   : > { %v1016_v60 = vpack.c.bf16 %v4040_v2, %v4040_v2  ;;  %v1818_v61 = vsel %vm1629_vm3, %v1321_v51, 0  ;;  %v1315_v62 = vcombine.low %v1296_v52, %v1312_v53  ;;  %v1517_v4 = vcombine.low %v1492_v25, %v1500_v26 }
 0x232   : > { %v1533_v5 = vcombine.low %v1508_v30, %v1516_v32  ;;  %v1864_v6 = vsel %vm1629_vm3, %v1322_v56, 0  ;;  %v1316_v1 = vcombine.high %v1296_v52, %v1312_v53  ;;  %v1009_v7 = vcombine.low %v985_v58, %v1001_v59 }
 0x233   : > { %v978_v2 = vcombine.high %v4134_v24, %v960_v33  ;;  %v994_v8 = vcombine.high %v968_v34, %v976_v35  ;;  %v1010_v9 = vcombine.high %v985_v58, %v1001_v59  ;;  %v1323_v10 = vpack.c.bf16 %v1315_v62, %v1315_v62 }
 0x234   : > { %3450 = vmatmul.mubr.msk.bf16.vlgmr.msra.gmra.mrb[4].mxu1 %vm1629_vm3, %v1015_v57  ;;  %v1525_v11 = vrot.slane %v1517_v4, %v3998_v31  ;;  %v1541_v12 = vrot.slane %v1533_v5, %v3998_v31  ;;  %v1324_v13 = vpack.c.bf16 %v1316_v1, %v1316_v1  ;;  %v1017_v15 = vpack.c.bf16 %v1009_v7, %v1009_v7 }
 0x235   : > { %3456 = vmatmul.mubr.msk.bf16.vlgmr.msra.gmra.mrb[8].mxu0 %vm1629_vm3, %v1016_v60  ;;  %3460 = vmatpush3.bf16.xpose.msra.mxu1 %v1818_v61  ;;  %v992_v16 = vrot.slane %v978_v2, %v3998_v31  ;;  %v1008_v17 = vrot.slane %v994_v8, %v3998_v31  ;;  %v1018_v18 = vpack.c.bf16 %v1010_v9, %v1010_v9  ;;  %v1910_v19 = vsel %vm1629_vm3, %v1323_v10, 0 }
 0x236   : > { %3466 = vmatpush3.bf16.xpose.msra.mxu0 %v1864_v6  ;;  %3461 = vmatprep.mubr.msk.bf16.mxu1 %vm3774_vm1, %v3773_v3  ;;  %v1549_v20 = vcombine.low %v1525_v11, %v1541_v12  ;;  %v1956_v14 = vsel %vm1629_vm3, %v1324_v13, 0  ;;  %v1550_v22 = vcombine.high %v1525_v11, %v1541_v12 }
 0x237   : > { %3467 = vmatprep.mubr.msk.bf16.mxu0 %vm3774_vm1, %v3773_v3  ;;  %3471 = vmatprep.subr.bf16.mxu1 %v3773_v3  ;;  %v1011_v23 = vcombine.low %v992_v16, %v1008_v17  ;;  %v1012_v24 = vcombine.high %v992_v16, %v1008_v17  ;;  %v4234_v16 = vpop.permute.xlu1 %1327 }
 0x238   : > { %3477 = vmatprep.subr.bf16.mxu0 %v3773_v3  ;;  %v1621_v44 = vpack.c.bf16 %v1549_v20, %v1549_v20  ;;  %v1622_v46 = vpack.c.bf16 %v1550_v22, %v1550_v22 }
 0x239   : > { %v1019_v25 = vpack.c.bf16 %v1011_v23, %v1011_v23  ;;  %v1020_v26 = vpack.c.bf16 %v1012_v24, %v1012_v24 }
 0x23a   : > { %v2083_v30 = vsel %vm2081_vm4, %v1621_v44, 0  ;;  %v2129_v32 = vsel %vm2081_vm4, %v1622_v46, 0  ;;  %v1623_v46 = vpack.c.bf16 %v4166_v54, %v4166_v54 }
 0x23c   : > { %3462 = vmatmul.mubr.msk.bf16.vlgmr.msra.gmra.mrb[8].mxu1 %vm1629_vm3, %v1017_v15 }
 0x23d   : > { %3468 = vmatmul.mubr.msk.bf16.vlgmr.msra.gmra.mrb[12].mxu0 %vm1629_vm3, %v1018_v18  ;;  %3472 = vmatpush3.bf16.xpose.msra.mxu1 %v1910_v19 }
 0x23e   : > { %3478 = vmatpush3.bf16.xpose.msra.mxu0 %v1956_v14  ;;  %3473 = vmatprep.mubr.msk.bf16.mxu1 %vm3774_vm1, %v3773_v3 }
 0x23f   : > { %3479 = vmatprep.mubr.msk.bf16.mxu0 %vm3774_vm1, %v3773_v3  ;;  %3483 = vmatprep.subr.bf16.mxu1 %v3773_v3 }
 0x240   : > { %3489 = vmatprep.subr.bf16.mxu0 %v3773_v3 }
 0x244   : > { %3474 = vmatmul.mubr.msk.bf16.vlgmr.msra.gmra.mrb[12].mxu1 %vm1629_vm3, %v1019_v25 }
 0x245   : > { %3480 = vmatmul.mubr.msk.bf16.vlgmr.msra.gmra.mrb[16].mxu0 %vm1629_vm3, %v1020_v26  ;;  %3484 = vmatpush3.bf16.msra.mxu1 %v2083_v30  ;;  %v1624_v26 = vpack.c.bf16 %v4168_v55, %v4168_v55 }
 0x246   : > { %3490 = vmatpush3.bf16.msra.mxu0 %v2129_v32  ;;  %3485 = vmatprep.mubr.msk.bf16.mxu1 %vm3774_vm1, %v3773_v3 }
 0x247   : > { %3491 = vmatprep.mubr.msk.bf16.mxu0 %vm3774_vm1, %v3773_v3  ;;  %3495 = vmatprep.subr.bf16.mxu1 %v3773_v3  ;;  %v2221_v54 = vsel %vm2081_vm4, %v1624_v26, 0 }
 0x248   : > { %3501 = vmatprep.subr.bf16.mxu0 %v3773_v3 }
 0x2ff   : > { %v1670_v33 = vpop.f32.mrb[0].mxu1 }
 0x300   : > { %v1716_v34 = vpop.f32.mrb[4].mxu0  ;;  %v3439_v35 = vpop.f32.mrb[1].mxu1  ;;  %v1998_v28 = vsel %vm1629_vm3, %v1670_v33, -inf }
 0x301   : > { %v3445_v29 = vpop.f32.mrb[5].mxu0  ;;  %1999 = vmax.xlane.f32.xlu0 %v1998_v28  ;;  %v1673_v47 = vpop.f32.mrb[2].mxu1  ;;  %v2001_v37 = vsel %vm1629_vm3, %v1716_v34, -inf }
 0x302   : > { %2002 = vmax.xlane.f32.xlu1 %v2001_v37  ;;  %v1719_v38 = vpop.f32.mrb[6].mxu0  ;;  %v3440_v39 = vpop.f32.mrb[3].mxu1  ;;  %v2175_v47 = vsel %vm2081_vm4, %v1623_v46, 0 }
 0x303   : > { %v3446_v40 = vpop.f32.mrb[7].mxu0 }
 0x307   : > { %v1762_v41 = vpop.f32.mrb[4].mxu1 }
 0x308   : > { %v1808_v63 = vpop.f32.mrb[8].mxu0  ;;  %v3451_v42 = vpop.f32.mrb[5].mxu1  ;;  %v2004_v0 = vsel %vm1629_vm3, %v1762_v41, -inf }
 0x309   : > { %v3457_v43 = vpop.f32.mrb[9].mxu0  ;;  %2005 = vmax.xlane.f32.xlu0 %v2004_v0  ;;  %v1765_v48 = vpop.f32.mrb[6].mxu1  ;;  %v2007_v49 = vsel %vm1629_vm3, %v1808_v63, -inf }
 0x30a   : > { %2008 = vmax.xlane.f32.xlu1 %v2007_v49  ;;  %v1811_v51 = vpop.f32.mrb[10].mxu0  ;;  %v3452_v52 = vpop.f32.mrb[7].mxu1 }
 0x30b   : > { %v3458_v53 = vpop.f32.mrb[11].mxu0 }
 0x30f   : > { %v1854_v56 = vpop.f32.mrb[8].mxu1 }
 0x310   : > { %v4215_v57 = vpop.f32.mrb[12].mxu0  ;;  %v3463_v58 = vpop.f32.mrb[9].mxu1  ;;  %v2010_v59 = vsel %vm1629_vm3, %v1854_v56, -inf }
 0x311   : > { %v3469_v60 = vpop.f32.mrb[13].mxu0  ;;  %2011 = vmax.xlane.f32.xlu0 %v2010_v59  ;;  %v1857_v61 = vpop.f32.mrb[10].mxu1  ;;  %v2013_v6 = vsel %vm1629_vm3, %v4215_v57, -inf }
 0x312   : > { %v1903_v62 = vpop.f32.mrb[14].mxu0  ;;  %v3464_v4 = vpop.f32.mrb[11].mxu1 }
 0x313   : > { %v3470_v5 = vpop.f32.mrb[15].mxu0 }
 0x315   : > { %2014 = vmax.xlane.f32.xlu0 %v2013_v6 }
 0x317   : > { %v4220_v1 = vpop.f32.mrb[12].mxu1 }
 0x318   : > { %v4222_v7 = vpop.f32.mrb[16].mxu0  ;;  %v3475_v2 = vpop.f32.mrb[13].mxu1  ;;  %v2016_v15 = vsel %vm1629_vm3, %v4220_v1, -inf }
 0x319   : > { %v3481_v8 = vpop.f32.mrb[17].mxu0  ;;  %v1949_v9 = vpop.f32.mrb[14].mxu1  ;;  %v2019_v13 = vsel %vm1629_vm3, %v4222_v7, -inf }
 0x31a   : > { %v1995_v10 = vpop.f32.mrb[18].mxu0  ;;  %v3476_v11 = vpop.f32.mrb[15].mxu1 }
 0x31b   : > { %1335 = vrot.lane.b32.xlu1 %v4014_v45, %s3781_s29  ;;  %v3482_v12 = vpop.f32.mrb[19].mxu0 }
 0x31f   : > { %1339 = vrot.lane.b32.xlu1 %v4016_v50, %s3781_s29 }
 0x32b   : > { %1331 = vrot.lane.b32.xlu0 %v4004_v36, %s3781_s29 }
 0x343   : > { %2020 = vmax.xlane.f32.xlu1 %v2019_v13 }
 0x34a   : > { %2017 = vmax.xlane.f32.xlu0 %v2016_v15 }
 0x38e   : > { %v2000_v17 = vpop.xlane.xlu0 %1999 }
 0x38f   : > { %v2022_v18 = vsub.f32 %v1670_v33, %v2000_v17  ;;  %v2003_v45 = vpop.xlane.xlu1 %2002 }
 0x390   : > { %v2023_v19 = vsub.f32 %v1716_v34, %v2003_v45 }
 0x391   : > { %v2030_v20 = vmul.f32 1.442695, %v2022_v18 }
 0x392   : > { %v2032_v14 = vmul.f32 1.442695, %v2023_v19 }
 0x393   : > { %3632 = vpow2.f32 %v2030_v20 }
 0x394   : > { %3634 = vpow2.f32 %v2032_v14 }
 0x396   : > { %v2006_v50 = vpop.xlane.xlu0 %2005 }
 0x397   : > { %v2024_v36 = vsub.f32 %v1762_v41, %v2006_v50  ;;  %v2009_v22 = vpop.xlane.xlu1 %2008 }
 0x398   : > { %v2025_v23 = vsub.f32 %v1808_v63, %v2009_v22 }
 0x399   : > { %v2034_v24 = vmul.f32 1.442695, %v2024_v36 }
 0x39a   : > { %v2036_v44 = vmul.f32 1.442695, %v2025_v23 }
 0x39b   : > { %3636 = vpow2.f32 %v2034_v24  ;;  %v1336_v29 = vpop.permute.xlu1 %1335 }
 0x39c   : > { %3638 = vpow2.f32 %v2036_v44  ;;  %v1417_v41 = vcombine.low %v4234_v16, %v1336_v29  ;;  %v1418_v63 = vcombine.high %v4234_v16, %v1336_v29 }
 0x39d   : > { %v3633_v25 = vpop.eup %3632 }
 0x39e   : > { %v3635_v30 = vpop.eup %3634  ;;  %v2012_v32 = vpop.xlane.xlu0 %2011  ;;  %v2046_v33 = vsel %vm1629_vm3, %v3633_v25, 0.0  ;;  %v2070_v34 = vpack.c.bf16 %v3633_v25, %v3633_v25  ;;  %v1425_v58 = vrot.slane %v1417_v41, %v3993_v27  ;;  %v1432_v59 = vrot.slane %v1418_v63, %v3993_v27 }
 0x39f   : > { %v2026_v35 = vsub.f32 %v1854_v56, %v2012_v32  ;;  %2047 = vadd.xlane.f32.xlu0 %v2046_v33  ;;  %v2071_v28 = vpack.c.bf16 %v3635_v30, %v3635_v30  ;;  %v2049_v38 = vsel %vm1629_vm3, %v3635_v30, 0.0  ;;  %v1340_v43 = vpop.permute.xlu1 %1339 }
 0x3a0   : > { %3486 = vmatmul.mubr.msk.bf16.vlgmr.msra.gmra.mrb[16].mxu1 %vm1629_vm3, %v2070_v34 }
 0x3a1   : > { %v2038_v37 = vmul.f32 1.442695, %v2026_v35  ;;  %3492 = vmatmul.mubr.msk.bf16.vlgmr.msra.gmra.mrb[20].mxu0 %vm1629_vm3, %v2071_v28  ;;  %3496 = vmatpush3.bf16.msra.mxu1 %v2175_v47 }
 0x3a2   : > { %3502 = vmatpush3.bf16.msra.mxu0 %v2221_v54  ;;  %v2015_v55 = vpop.xlane.xlu0 %2014  ;;  %3497 = vmatprep.mubr.msk.bf16.mxu1 %vm3774_vm1, %v3773_v3 }
 0x3a3   : > { %3640 = vpow2.f32 %v2038_v37  ;;  %v2027_v39 = vsub.f32 %v4215_v57, %v2015_v55  ;;  %2050 = vadd.xlane.f32.xlu0 %v2049_v38  ;;  %3503 = vmatprep.mubr.msk.bf16.mxu0 %vm3774_vm1, %v3773_v3 }
 0x3a4   : > { %3507 = vmatprep.subr.bf16.mxu1 %v3773_v3  ;;  %3513 = vmatprep.subr.bf16.mxu0 %v3773_v3 }
 0x3a5   : > { %v3637_v40 = vpop.eup %3636  ;;  %v2040_v42 = vmul.f32 1.442695, %v2027_v39 }
 0x3a6   : > { %v3639_v0 = vpop.eup %3638  ;;  %v1332_v48 = vpop.permute.xlu0 %1331  ;;  %v2052_v49 = vsel %vm1629_vm3, %v3637_v40, 0.0  ;;  %v2072_v51 = vpack.c.bf16 %v3637_v40, %v3637_v40 }
 0x3a7   : > { %3642 = vpow2.f32 %v2040_v42  ;;  %v1433_v52 = vcombine.low %v1332_v48, %v1340_v43  ;;  %v1434_v53 = vcombine.high %v1332_v48, %v1340_v43  ;;  %v2055_v56 = vsel %vm1629_vm3, %v3639_v0, 0.0  ;;  %2053 = vadd.xlane.f32.xlu1 %v2052_v49 }
 0x3a8   : > { %2056 = vadd.xlane.f32.xlu0 %v2055_v56  ;;  %3498 = vmatmul.mubr.msk.bf16.vlgmr.msra.gmra.mrb[20].mxu1 %vm1629_vm3, %v2072_v51  ;;  %v2073_v57 = vpack.c.bf16 %v3639_v0, %v3639_v0 }
 0x3a9   : > { %v1441_v60 = vrot.slane %v1433_v52, %v3993_v27  ;;  %v1448_v61 = vrot.slane %v1434_v53, %v3993_v27  ;;  %3509 = vmatprep.mubr.msk.bf16.mxu1 %vm3774_vm1, %v3773_v3 }
 0x3aa   : > { %3504 = vmatmul.mubr.msk.bf16.vlgmr.msra.gmra.mrb[24].mxu0 %vm1629_vm3, %v2073_v57 }
 0x3ab   : > { %v1449_v62 = vcombine.low %v1425_v58, %v1441_v60  ;;  %v1450_v4 = vcombine.high %v1425_v58, %v1441_v60  ;;  %v1465_v5 = vcombine.low %v1432_v59, %v1448_v61  ;;  %v1466_v6 = vcombine.high %v1432_v59, %v1448_v61  ;;  %3515 = vmatprep.mubr.msk.bf16.mxu0 %vm3774_vm1, %v3773_v3 }
 0x3ad   : > { %v3641_v2 = vpop.eup %3640  ;;  %v1457_v8 = vrot.slane %v1449_v62, %v3998_v31  ;;  %v1464_v9 = vrot.slane %v1450_v4, %v3998_v31  ;;  %v1473_v10 = vrot.slane %v1465_v5, %v3998_v31  ;;  %v1480_v11 = vrot.slane %v1466_v6, %v3998_v31 }
 0x3ae   : > { %v2058_v12 = vsel %vm1629_vm3, %v3641_v2, 0.0  ;;  %v2074_v55 = vpack.c.bf16 %v3641_v2, %v3641_v2 }
 0x3af   : > { %v1553_v13 = vcombine.low %v1457_v8, %v1464_v9  ;;  %v3332_v15 = vcombine.high %v1457_v8, %v1464_v9  ;;  %v1569_v16 = vcombine.low %v1473_v10, %v1480_v11  ;;  %v3333_v17 = vcombine.high %v1473_v10, %v1480_v11  ;;  %2059 = vadd.xlane.f32.xlu1 %v2058_v12 }
 0x3b1   : > { %v3643_v18 = vpop.eup %3642  ;;  %v1560_v45 = vrot.slane %v1553_v13, %v3993_v27  ;;  %v1568_v19 = vrot.slane %v3332_v15, %v3993_v27  ;;  %v1576_v20 = vrot.slane %v1569_v16, %v3993_v27  ;;  %v1584_v14 = vrot.slane %v3333_v17, %v3993_v27 }
 0x3b2   : > { %v2061_v50 = vsel %vm1629_vm3, %v3643_v18, 0.0  ;;  %v2075_v38 = vpack.c.bf16 %v3643_v18, %v3643_v18 }
 0x3b3   : > { %2062 = vadd.xlane.f32.xlu0 %v2061_v50  ;;  %v1585_v36 = vcombine.low %v1560_v45, %v1568_v19  ;;  %v1601_v22 = vcombine.low %v1576_v20, %v1584_v14  ;;  %v1586_v23 = vcombine.high %v1560_v45, %v1568_v19  ;;  %v1602_v24 = vcombine.high %v1576_v20, %v1584_v14 }
 0x3b5   : > { %v1593_v44 = vrot.slane %v1585_v36, %v3998_v31  ;;  %v1609_v46 = vrot.slane %v1601_v22, %v3998_v31  ;;  %v1600_v25 = vrot.slane %v1586_v23, %v3998_v31  ;;  %v1616_v26 = vrot.slane %v1602_v24, %v3998_v31 }
 0x3b7   : > { %v1617_v30 = vcombine.low %v1593_v44, %v1609_v46  ;;  %v1618_v32 = vcombine.high %v1593_v44, %v1609_v46  ;;  %v1619_v33 = vcombine.low %v1600_v25, %v1616_v26  ;;  %v1620_v34 = vcombine.high %v1600_v25, %v1616_v26 }
 0x3b9   : > { %v1625_v35 = vpack.c.bf16 %v1617_v30, %v1617_v30  ;;  %v1626_v28 = vpack.c.bf16 %v1618_v32, %v1618_v32  ;;  %v1627_v37 = vpack.c.bf16 %v1619_v33, %v1619_v33  ;;  %v1628_v54 = vpack.c.bf16 %v1620_v34, %v1620_v34 }
 0x3bb   : > { %v2267_v29 = vsel %vm2081_vm4, %v1625_v35, 0  ;;  %v2313_v47 = vsel %vm2081_vm4, %v1626_v28, 0  ;;  %v2359_v39 = vsel %vm2081_vm4, %v1627_v37, 0  ;;  %v2405_v40 = vsel %vm2081_vm4, %v1628_v54, 0 }
 0x3bc   : > { %3508 = vmatpush3.bf16.msra.mxu1 %v2267_v29  ;;  %3514 = vmatpush3.bf16.msra.mxu0 %v2313_v47 }
 0x3bd   : > { %3519 = vmatprep.subr.bf16.mxu1 %v3773_v3  ;;  %3525 = vmatprep.subr.bf16.mxu0 %v3773_v3 }
 0x3bf   : > { %3510 = vmatmul.mubr.msk.bf16.vlgmr.msra.gmra.mrb[24].mxu1 %vm1629_vm3, %v2074_v55  ;;  %3516 = vmatmul.mubr.msk.bf16.vlgmr.msra.gmra.mrb[28].mxu0 %vm1629_vm3, %v2075_v38 }
 0x3c0   : > { %3520 = vmatpush3.bf16.msra.mxu1 %v2359_v39  ;;  %3526 = vmatpush3.bf16.msra.mxu0 %v2405_v40 }
 0x3c1   : > { %3527 = vmatprep.mubr.msk.bf16.mxu0 %vm3774_vm1, %v3773_v3  ;;  %3521 = vmatprep.mubr.msk.bf16.mxu1 %vm3774_vm1, %v3773_v3 }
 0x3c2   : > { %3531 = vmatprep.subr.bf16.mxu1 %v3773_v3  ;;  %3539 = vmatprep.subr.bf16.mxu0 %v3773_v3 }
 0x3d0   : > { %v2021_v41 = vpop.xlane.xlu1 %2020 }
 0x3d1   : > { %v2029_v63 = vsub.f32 %v4222_v7, %v2021_v41 }
 0x3d3   : > { %v2044_v42 = vmul.f32 1.442695, %v2029_v63 }
 0x3d5   : > { %3644 = vpow2.f32 %v2044_v42 }
 0x3d7   : > { %v2018_v0 = vpop.xlane.xlu0 %2017 }
 0x3d8   : > { %v2028_v43 = vsub.f32 %v4220_v1, %v2018_v0 }
 0x3da   : > { %v2042_v48 = vmul.f32 1.442695, %v2028_v43 }
 0x3dc   : > { %3646 = vpow2.f32 %v2042_v48 }
 0x3df   : > { %v3645_v49 = vpop.eup %3644 }
 0x3e0   : > { %v2067_v51 = vsel %vm1629_vm3, %v3645_v49, 0.0  ;;  %v2077_v52 = vpack.c.bf16 %v3645_v49, %v3645_v49 }
 0x3e1   : > { %2068 = vadd.xlane.f32.xlu0 %v2067_v51 }
 0x3e2   : > { %3528 = vmatmul.mubr.msk.bf16.vlgmr.msra.gmra.mrb[32].mxu0 %vm1629_vm3, %v2077_v52 }
 0x3e3   : > { %3543 = vmatprep.mubr.msk.bf16.mxu0 %vm3774_vm1, %v3773_v3 }
 0x3e6   : > { %v3647_v53 = vpop.eup %3646 }
 0x3e7   : > { %v2064_v7 = vsel %vm1629_vm3, %v3647_v53, 0.0  ;;  %v2076_v56 = vpack.c.bf16 %v3647_v53, %v3647_v53 }
 0x3e8   : > { %2065 = vadd.xlane.f32.xlu1 %v2064_v7 }
 0x3e9   : > { %3522 = vmatmul.mubr.msk.bf16.vlgmr.msra.gmra.mrb[28].mxu1 %vm1629_vm3, %v2076_v56 }
 0x3ea   : > { %3535 = vmatprep.mubr.msk.bf16.mxu1 %vm3774_vm1, %v3773_v3 }
 0x42c   : > { %v2048_v1 = vpop.xlane.xlu0 %2047 }
 0x42d   : > { %3648 = vrcp.f32 %v2048_v1 }
 0x430   : > { %v2051_v57 = vpop.xlane.xlu0 %2050 }
 0x434   : > { %v2054_v58 = vpop.xlane.xlu1 %2053 }
 0x435   : > { %v2057_v59 = vpop.xlane.xlu0 %2056  ;;  %3650 = vrcp.f32 %v2054_v58 }
 0x436   : > { %3652 = vrcp.f32 %v2051_v57 }
 0x437   : > { %3654 = vrcp.f32 %v2057_v59  ;;  %v3649_v9 = vpop.eup %3648 }
 0x43f   : > { %v3651_v10 = vpop.eup %3650 }
 0x440   : > { %v3653_v12 = vpop.eup %3652 }
 0x441   : > { %v3655_v17 = vpop.eup %3654 }
 0x473   : > { %v2119_v60 = vpop.f32.mrb[16].mxu1 }
 0x474   : > { %v2165_v61 = vpop.f32.mrb[20].mxu0  ;;  %v3487_v62 = vpop.f32.mrb[17].mxu1  ;;  %v2455_v13 = vmul.f32 %v3649_v9, %v2119_v60 }
 0x475   : > { %v3493_v4 = vpop.f32.mrb[21].mxu0  ;;  %v2122_v5 = vpop.f32.mrb[18].mxu1  ;;  %v2456_v19 = vmul.f32 %v3653_v12, %v2165_v61 }
 0x476   : > { %v2168_v6 = vpop.f32.mrb[22].mxu0  ;;  %v3488_v2 = vpop.f32.mrb[19].mxu1 }
 0x477   : > { %v3494_v8 = vpop.f32.mrb[23].mxu0  ;;  %v2063_v9 = vpop.xlane.xlu0 %2062 }
 0x478   : > { %3656 = vrcp.f32 %v2063_v9 }
 0x47b   : > { %v2211_v11 = vpop.f32.mrb[20].mxu1 }
 0x47c   : > { %v2457_v15 = vmul.f32 %v3651_v10, %v2211_v11  ;;  %v3499_v16 = vpop.f32.mrb[21].mxu1  ;;  %v2069_v10 = vpop.xlane.xlu0 %2068 }
 0x47d   : > { %v2257_v18 = vpop.f32.mrb[24].mxu0  ;;  %v2214_v45 = vpop.f32.mrb[22].mxu1  ;;  %3658 = vrcp.f32 %v2069_v10  ;;  %v3625_v10 = vld [vmem:[%s3924_s27 + $0x8] sm:$0xff]  }
 0x47e   : > { %v2463_v20 = vcombine.low %v2455_v13, %v2457_v15  ;;  %v2464_v14 = vcombine.high %v2455_v13, %v2457_v15  ;;  %v2458_v50 = vmul.f32 %v3655_v17, %v2257_v18  ;;  %v3505_v36 = vpop.f32.mrb[25].mxu0  ;;  %v3500_v22 = vpop.f32.mrb[23].mxu1 }
 0x47f   : > { %v2260_v23 = vpop.f32.mrb[26].mxu0  ;;  %v2060_v11 = vpop.xlane.xlu1 %2059 }
 0x480   : > { %v2471_v24 = vrot.slane %v2463_v20, %v3993_v27  ;;  %v2478_v44 = vrot.slane %v2464_v14, %v3993_v27  ;;  %v2479_v46 = vcombine.low %v2456_v19, %v2458_v50  ;;  %v2480_v25 = vcombine.high %v2456_v19, %v2458_v50  ;;  %v3506_v26 = vpop.f32.mrb[27].mxu0 }
 0x481   : > { %3660 = vrcp.f32 %v2060_v11 }
 0x482   : > { %v2487_v30 = vrot.slane %v2479_v46, %v3993_v27  ;;  %v2494_v32 = vrot.slane %v2480_v25, %v3993_v27  ;;  %v3657_v13 = vpop.eup %3656 }
 0x483   : > { %v2066_v12 = vpop.xlane.xlu1 %2065 }
 0x484   : > { %v2495_v33 = vcombine.low %v2471_v24, %v2487_v30  ;;  %v2496_v34 = vcombine.high %v2471_v24, %v2487_v30  ;;  %v2511_v35 = vcombine.low %v2478_v44, %v2494_v32  ;;  %v2512_v28 = vcombine.high %v2478_v44, %v2494_v32 }
 0x485   : > { %3662 = vrcp.f32 %v2066_v12 }
 0x486   : > { %v2503_v29 = vrot.slane %v2495_v33, %v3998_v31  ;;  %v2510_v47 = vrot.slane %v2496_v34, %v3998_v31  ;;  %v2519_v37 = vrot.slane %v2511_v35, %v3998_v31  ;;  %v2526_v54 = vrot.slane %v2512_v28, %v3998_v31 }
 0x487   : > { %v3659_v15 = vpop.eup %3658 }
 0x488   : > { %v2599_v55 = vcombine.low %v2503_v29, %v2510_v47  ;;  %v3350_v38 = vcombine.high %v2503_v29, %v2510_v47  ;;  %v2615_v39 = vcombine.low %v2519_v37, %v2526_v54  ;;  %v3351_v40 = vcombine.high %v2519_v37, %v2526_v54 }
 0x48a   : > { %v2606_v41 = vrot.slane %v2599_v55, %v3993_v27  ;;  %v2614_v63 = vrot.slane %v3350_v38, %v3993_v27  ;;  %v2622_v42 = vrot.slane %v2615_v39, %v3993_v27  ;;  %v2630_v0 = vrot.slane %v3351_v40, %v3993_v27 }
 0x48b   : > { %v3661_v36 = vpop.eup %3660 }
 0x48c   : > { %v2632_v43 = vcombine.high %v2606_v41, %v2614_v63  ;;  %v2648_v48 = vcombine.high %v2622_v42, %v2630_v0  ;;  %v2631_v49 = vcombine.low %v2606_v41, %v2614_v63  ;;  %v2647_v51 = vcombine.low %v2622_v42, %v2630_v0 }
 0x48e   : > { %v4318_v52 = vrot.slane %v2632_v43, %v3998_v31  ;;  %v4321_v53 = vrot.slane %v2648_v48, %v3998_v31  ;;  %v4324_v7 = vrot.slane %v2631_v49, %v3998_v31  ;;  %v4327_v56 = vrot.slane %v2647_v51, %v3998_v31  ;;  %v3624_v43 = vld [vmem:[%s3924_s27] sm:$0xff]   ;;  %s3782_s27 = smov 16  }
 0x48f   : > { %v3663_v22 = vpop.eup %3662  ;;  %3532 = vmatpush3.bf16.msra.mxu1 %v3624_v43 }
 0x490   : > { %v2665_v1 = vcombine.low %v4318_v52, %v4321_v53  ;;  %v2663_v57 = vcombine.low %v4324_v7, %v4327_v56  ;;  %v2664_v58 = vcombine.high %v4324_v7, %v4327_v56  ;;  %v2666_v59 = vcombine.high %v4318_v52, %v4321_v53  ;;  %3533 = vmatprep.subr.bf16.mxu1 %v3773_v3  ;;  %v3626_v7 = vld [vmem:[%s3933_s14] sm:$0xff]   ;;  %v3627_v56 = vld [vmem:[%s3933_s14 + $0x8] sm:$0xff]  }
 0x491   : > { %3540 = vmatpush3.bf16.msra.mxu0 %v3626_v7 }
 0x492   : > { %v2303_v60 = vpop.f32.mrb[24].mxu1  ;;  %v2349_v61 = vpop.f32.mrb[28].mxu0  ;;  %3541 = vmatprep.subr.bf16.mxu0 %v3773_v3 }
 0x493   : > { %v3511_v62 = vpop.f32.mrb[25].mxu1  ;;  %v3517_v4 = vpop.f32.mrb[29].mxu0  ;;  %v2460_v17 = vmul.f32 %v3657_v13, %v2349_v61  ;;  %v2459_v24 = vmul.f32 %v3661_v36, %v2303_v60  ;;  %3534 = vmatpush3.bf16.msra.mxu1 %v3625_v10 }
 0x494   : > { %v2306_v5 = vpop.f32.mrb[26].mxu1  ;;  %v2352_v6 = vpop.f32.mrb[30].mxu0  ;;  %3547 = vmatprep.subr.bf16.mxu1 %v3773_v3 }
 0x495   : > { %v3512_v2 = vpop.f32.mrb[27].mxu1  ;;  %v3518_v8 = vpop.f32.mrb[31].mxu0  ;;  %3542 = vmatpush3.bf16.msra.mxu0 %v3627_v56 }
 0x4b5   : > { %v2441_v16 = vpop.f32.mrb[32].mxu0 }
 0x4b6   : > { %v2462_v18 = vmul.f32 %v3659_v15, %v2441_v16  ;;  %v3529_v45 = vpop.f32.mrb[33].mxu0 }
 0x4b7   : > { %v2444_v19 = vpop.f32.mrb[34].mxu0 }
 0x4b8   : > { %v2547_v20 = vcombine.low %v2460_v17, %v2462_v18  ;;  %v2548_v14 = vcombine.high %v2460_v17, %v2462_v18  ;;  %v3530_v50 = vpop.f32.mrb[35].mxu0 }
 0x4ba   : > { %v2555_v33 = vrot.slane %v2547_v20, %v3993_v27  ;;  %v2562_v34 = vrot.slane %v2548_v14, %v3993_v27 }
 0x4bc   : > { %v2395_v23 = vpop.f32.mrb[28].mxu1 }
 0x4bd   : > { %v2461_v44 = vmul.f32 %v3663_v22, %v2395_v23  ;;  %v3523_v46 = vpop.f32.mrb[29].mxu1 }
 0x4be   : > { %v2398_v25 = vpop.f32.mrb[30].mxu1  ;;  %v3354_v46 = vld [vmem:[%s4528_s3] ss:$0 sm:$0xff] }
 0x4bf   : > { %v2531_v26 = vcombine.low %v2459_v24, %v2461_v44  ;;  %v2532_v30 = vcombine.high %v2459_v24, %v2461_v44  ;;  %v3524_v32 = vpop.f32.mrb[31].mxu1  ;;  %v3629_v44 = vld [vmem:[%s3943_s25 + $0x8] sm:$0xff]  }
 0x4c1   : > { %v2539_v35 = vrot.slane %v2531_v26, %v3993_v27  ;;  %v2546_v28 = vrot.slane %v2532_v30, %v3993_v27 }
 0x4c3   : > { %v2563_v29 = vcombine.low %v2539_v35, %v2555_v33  ;;  %v2564_v47 = vcombine.high %v2539_v35, %v2555_v33  ;;  %v2579_v37 = vcombine.low %v2546_v28, %v2562_v34  ;;  %v2580_v54 = vcombine.high %v2546_v28, %v2562_v34  ;;  %v3668_v33 = vld [vmem:[#allocation2] sm:$0xff] }
 0x4c5   : > { %v2571_v55 = vrot.slane %v2563_v29, %v3998_v31  ;;  %v2578_v38 = vrot.slane %v2564_v47, %v3998_v31  ;;  %v2587_v39 = vrot.slane %v2579_v37, %v3998_v31  ;;  %v2594_v40 = vrot.slane %v2580_v54, %v3998_v31  ;;  %v3669_v29 = vld [vmem:[#allocation2 + $0x8] sm:$0xff] }
 0x4c7   : > { %v2667_v41 = vcombine.low %v2571_v55, %v2578_v38  ;;  %v3352_v63 = vcombine.high %v2571_v55, %v2578_v38  ;;  %v2683_v42 = vcombine.low %v2587_v39, %v2594_v40  ;;  %v3353_v0 = vcombine.high %v2587_v39, %v2594_v40 }
 0x4c9   : > { %v2674_v48 = vrot.slane %v2667_v41, %v3993_v27  ;;  %v2682_v49 = vrot.slane %v3352_v63, %v3993_v27  ;;  %v2690_v51 = vrot.slane %v2683_v42, %v3993_v27  ;;  %v2698_v60 = vrot.slane %v3353_v0, %v3993_v27 }
 0x4cb   : > { %v2700_v61 = vcombine.high %v2674_v48, %v2682_v49  ;;  %v2716_v62 = vcombine.high %v2690_v51, %v2698_v60  ;;  %v2699_v4 = vcombine.low %v2674_v48, %v2682_v49  ;;  %v2715_v5 = vcombine.low %v2690_v51, %v2698_v60 }
 0x4cd   : > { %v2714_v6 = vrot.slane %v2700_v61, %v3998_v31  ;;  %v2730_v2 = vrot.slane %v2716_v62, %v3998_v31  ;;  %v2707_v8 = vrot.slane %v2699_v4, %v3998_v31  ;;  %v2723_v9 = vrot.slane %v2715_v5, %v3998_v31 }
 0x4cf   : > { %v2733_v11 = vcombine.low %v2714_v6, %v2730_v2  ;;  %v2732_v12 = vcombine.high %v2707_v8, %v2723_v9  ;;  %v2731_v13 = vcombine.low %v2707_v8, %v2723_v9  ;;  %v2734_v27 = vcombine.high %v2714_v6, %v2730_v2 }
 0x4d1   : > { %v3612_v15 = vpack.i.bf16 %v2733_v11, %v2665_v1  ;;  %v3607_v16 = vpack.i.bf16 %v2732_v12, %v2664_v58  ;;  %v3617_v31 = vpack.i.bf16 %v2734_v27, %v2666_v59  ;;  %v2837_v12 = vld [vmem:[%s630_s0] sm:$0x1] }
 0x4d3   : > { %3613 = vrot.lane.b32.xlu0 %v3612_v15, %s3782_s27  ;;  %3608 = vrot.lane.b32.xlu1 %v3607_v16, %s3783_s16 }
 0x4d7   : > { %3618 = vrot.lane.b32.xlu1 %v3617_v31, %s3784_s17  ;;  %v3358_v31 = vld [vmem:[%s633_s5] ss:$0 sm:$0xff] }
 0x545   : > { %v3614_v17 = vpop.permute.xlu0 %3613  ;;  %v3609_v18 = vpop.permute.xlu1 %3608 }
 0x546   : > { %v3611_v45 = vunpack.i.h.bf16 %v3609_v18  ;;  %v3610_v19 = vunpack.i.l.bf16 %v3609_v18  ;;  %v3616_v1 = vunpack.i.h.bf16 %v3614_v17  ;;  %v3615_v20 = vunpack.i.l.bf16 %v3614_v17 }
 0x548   : > { %v2759_v52 = vsel %vm1629_vm3, %v2663_v57, %v3610_v19  ;;  %v2760_v53 = vsel %vm1629_vm3, %v2731_v13, %v3611_v45  ;;  %v3628_v57 = vld [vmem:[%s3943_s25] sm:$0xff]   ;;  %v2869_v13 = vsub.s32 0, %v3989_v21 }
 0x549   : > { %v3619_v58 = vpop.permute.xlu1 %3618  ;;  %v2762_v50 = vsel %vm2761_vm5, %v2759_v52, %v3615_v20  ;;  %v2763_v36 = vsel %vm2761_vm5, %v2760_v53, %v3616_v1  ;;  %v3630_v20 = vld [vmem:[%s3943_s25 + $0x10] sm:$0xff]   ;;  %v3631_v52 = vld [vmem:[%s3943_s25 + $0x18] sm:$0xff]   ;;  %v3359_v53 = vld [vmem:[%s4529_s26] ss:$0 sm:$0xff] }
 0x54a   : > { %v3621_v59 = vunpack.i.h.bf16 %v3619_v58  ;;  %v3620_v14 = vunpack.i.l.bf16 %v3619_v58 }
 0x54c   : > { %v2765_v22 = vsel %vm2764_vm6, %v2762_v50, %v3620_v14  ;;  %v2766_v23 = vsel %vm2764_vm6, %v2763_v36, %v3621_v59 }
 0x54d   : > { %v2767_v24 = vpack.c.bf16 %v2766_v23, %v2765_v22 }
 0x54f   : > { %3536 = vmatmul.mubr.msk.bf16.vlgmr.msra.gmra.mrb[32].mxu1 %vm676_vm2, %v2767_v24 }
 0x550   : > { %3555 = vmatprep.mubr.msk.bf16.mxu1 %vm3774_vm1, %v3773_v3  ;;  %3548 = vmatpush3.bf16.msra.mxu1 %v3628_v57 }
 0x551   : > { %3549 = vmatprep.subr.bf16.mxu1 %v3773_v3 }
 0x554   : > { %3550 = vmatpush3.bf16.msra.mxu1 %v3629_v44 }
 0x555   : > { %3551 = vmatprep.subr.bf16.mxu1 %v3773_v3 }
 0x558   : > { %3552 = vmatpush3.bf16.msra.mxu1 %v3630_v20 }
 0x559   : > { %3553 = vmatprep.subr.bf16.mxu1 %v3773_v3  ;;  %v3363_v3 = vld [vmem:[%s627_s28] ss:$0 sm:$0xff] }
 0x55c   : > { %3554 = vmatpush3.bf16.msra.mxu1 %v3631_v52 }
 0x622   : > { %v2828_v25 = vpop.f32.mrb[32].mxu1 }
 0x623   : > { %v2829_v26 = vadd.f32 %v3354_v46, %v2828_v25  ;;  %v3537_v30 = vpop.f32.mrb[33].mxu1 }
 0x624   : > { %v2831_v32 = vpop.f32.mrb[34].mxu1 }
 0x625   : > { %v2835_v34 = vadd.f32 %v3668_v33, %v2829_v26  ;;  %v2832_v35 = vadd.f32 %v3354_v46, %v2831_v32  ;;  %v3538_v28 = vpop.f32.mrb[35].mxu1 }
 0x627   : > { %v2836_v47 = vadd.f32 %v3669_v29, %v2832_v35  ;;  %v2839_v37 = vsel %vm676_vm2, %v2835_v34, 0.0 }
 0x629   : > { %v2840_v54 = vsel %vm676_vm2, %v2836_v47, 0.0 }
 0x62a   : > { %v2841_v55 = vadd.f32 %v2840_v54, %v2839_v37 }
 0x62c   : > { %v2842_v38 = vrot.slane %v2841_v55, 4 }
 0x62e   : > { %v2843_v39 = vadd.f32 %v2842_v38, %v2841_v55 }
 0x630   : > { %v2844_v40 = vrot.slane %v2843_v39, 2 }
 0x632   : > { %v2845_v41 = vadd.f32 %v2844_v40, %v2843_v39 }
 0x634   : > { %v2846_v63 = vrot.slane %v2845_v41, 1 }
 0x636   : > { %v2847_v42 = vadd.f32 %v2846_v63, %v2845_v41 }
 0x638   : > { %v2849_v0 = vmul.f32 0.0625, %v2847_v42 }
 0x63a   : > { %v2850_v43 = vsub.f32 %v2835_v34, %v2849_v0  ;;  %v2851_v48 = vsub.f32 %v2836_v47, %v2849_v0 }
 0x63c   : > { %v2852_v49 = vmul.f32 %v2850_v43, %v2850_v43  ;;  %v2853_v51 = vmul.f32 %v2851_v48, %v2851_v48 }
 0x63e   : > { %v2854_v60 = vsel %vm676_vm2, %v2852_v49, 0.0  ;;  %v2855_v61 = vsel %vm676_vm2, %v2853_v51, 0.0 }
 0x63f   : > { %v2856_v62 = vadd.f32 %v2855_v61, %v2854_v60 }
 0x641   : > { %v2857_v4 = vrot.slane %v2856_v62, 4 }
 0x643   : > { %v2858_v5 = vadd.f32 %v2857_v4, %v2856_v62 }
 0x645   : > { %v2859_v6 = vrot.slane %v2858_v5, 2 }
 0x647   : > { %v2860_v2 = vadd.f32 %v2859_v6, %v2858_v5  ;;  %v3038_v6 = vld [vmem:[%s636_s21] sm:$0x1] }
 0x649   : > { %v2861_v8 = vrot.slane %v2860_v2, 1 }
 0x64b   : > { %v2862_v9 = vadd.f32 %v2861_v8, %v2860_v2 }
 0x64d   : > { %v2863_v10 = vmul.f32 0.0625, %v2862_v9 }
 0x64f   : > { %v2864_v11 = vadd.f32 1e-05, %v2863_v10  ;;  %v3369_v10 = vld [vmem:[%s639_s22] ss:$0 sm:$0xff] }
 0x651   : > { %3664 = vrsqrt.f32 %v2864_v11 }
 0x65b   : > { %v3665_v27 = vpop.eup %3664 }
 0x65c   : > { %v2866_v15 = vmul.f32 %v3665_v27, %v2837_v12 }
 0x65e   : > { %v2870_v16 = vrot.slane %v2866_v15, %v2869_v13 }
 0x660   : > { %v2871_v17 = vmul.f32 %v2870_v16, %v2850_v43  ;;  %v2872_v18 = vmul.f32 %v2870_v16, %v2851_v48 }
 0x662   : > { %v2879_v45 = vadd.f32 %v3358_v31, %v2871_v17  ;;  %v2880_v19 = vadd.f32 %v3358_v31, %v2872_v18 }
 0x664   : > { %v2881_v1 = vpack.c.bf16 %v2880_v19, %v2879_v45 }
 0x666   : > { %3544 = vmatmul.mubr.msk.bf16.vlgmr.msra.gmra.mrb[36].mxu0 %vm676_vm2, %v2881_v1 }
 0x739   : > { %v2942_v58 = vpop.f32.mrb[36].mxu0 }
 0x73a   : > { %v2943_v59 = vadd.f32 %v3359_v53, %v2942_v58  ;;  %v3545_v14 = vpop.f32.mrb[37].mxu0 }
 0x73b   : > { %v2945_v50 = vpop.f32.mrb[38].mxu0 }
 0x73c   : > { %v2946_v36 = vadd.f32 %v3359_v53, %v2945_v50  ;;  %v3546_v22 = vpop.f32.mrb[39].mxu0  ;;  %v2949_v23 = vmax.f32 %v2943_v59, 0.0 }
 0x73e   : > { %v2950_v24 = vmax.f32 %v2946_v36, 0.0 }
 0x740   : > { %v2951_v7 = vpack.c.bf16 %v2950_v24, %v2949_v23 }
 0x742   : > { %3556 = vmatmul.mubr.msk.bf16.vlgmr.msra.gmra.mrb[36].mxu1 %vm2991_vm7, %v2951_v7 }
 0x815   : > { %v3029_v56 = vpop.f32.mrb[36].mxu1 }
 0x816   : > { %v3030_v57 = vadd.f32 %v3363_v3, %v3029_v56  ;;  %v3557_v44 = vpop.f32.mrb[37].mxu1 }
 0x817   : > { %v3032_v46 = vpop.f32.mrb[38].mxu1 }
 0x818   : > { %v3036_v25 = vadd.f32 %v3030_v57, %v2879_v45  ;;  %v3033_v26 = vadd.f32 %v3363_v3, %v3032_v46  ;;  %v3558_v30 = vpop.f32.mrb[39].mxu1 }
 0x81a   : > { %v3037_v32 = vadd.f32 %v3033_v26, %v2880_v19  ;;  %v3040_v33 = vsel %vm676_vm2, %v3036_v25, 0.0 }
 0x81c   : > { %v3041_v34 = vsel %vm676_vm2, %v3037_v32, 0.0 }
 0x81d   : > { %v3042_v35 = vadd.f32 %v3041_v34, %v3040_v33 }
 0x81f   : > { %v3043_v28 = vrot.slane %v3042_v35, 4 }
 0x821   : > { %v3044_v29 = vadd.f32 %v3043_v28, %v3042_v35 }
 0x823   : > { %v3045_v47 = vrot.slane %v3044_v29, 2 }
 0x825   : > { %v3046_v37 = vadd.f32 %v3045_v47, %v3044_v29 }
 0x827   : > { %v3047_v54 = vrot.slane %v3046_v37, 1 }
 0x829   : > { %v3048_v55 = vadd.f32 %v3047_v54, %v3046_v37 }
 0x82b   : > { %v3049_v38 = vmul.f32 0.0625, %v3048_v55 }
 0x82d   : > { %v3050_v39 = vsub.f32 %v3036_v25, %v3049_v38  ;;  %v3051_v40 = vsub.f32 %v3037_v32, %v3049_v38 }
 0x82f   : > { %v3052_v41 = vmul.f32 %v3050_v39, %v3050_v39  ;;  %v3053_v63 = vmul.f32 %v3051_v40, %v3051_v40 }
 0x831   : > { %v3054_v42 = vsel %vm676_vm2, %v3052_v41, 0.0  ;;  %v3055_v0 = vsel %vm676_vm2, %v3053_v63, 0.0 }
 0x832   : > { %v3056_v43 = vadd.f32 %v3055_v0, %v3054_v42 }
 0x834   : > { %v3057_v48 = vrot.slane %v3056_v43, 4 }
 0x836   : > { %v3058_v49 = vadd.f32 %v3057_v48, %v3056_v43 }
 0x838   : > { %v3059_v51 = vrot.slane %v3058_v49, 2 }
 0x83a   : > { %v3060_v60 = vadd.f32 %v3059_v51, %v3058_v49 }
 0x83c   : > { %v3061_v61 = vrot.slane %v3060_v60, 1 }
 0x83e   : > { %v3062_v62 = vadd.f32 %v3061_v61, %v3060_v60 }
 0x840   : > { %v3063_v4 = vmul.f32 0.0625, %v3062_v62 }
 0x842   : > { %v3064_v5 = vadd.f32 1e-05, %v3063_v4 }
 0x844   : > { %3666 = vrsqrt.f32 %v3064_v5 }
 0x84e   : > { %v3667_v2 = vpop.eup %3666 }
 0x84f   : > { %v3066_v8 = vmul.f32 %v3667_v2, %v3038_v6 }
 0x851   : > { %v3070_v9 = vrot.slane %v3066_v8, %v2869_v13  ;;  %3086 = sbr.rel (%p3370_p4) target bundleno = 2152 (0x868), region = 84 }
 0x853   : > { %v3071_v11 = vmul.f32 %v3070_v9, %v3050_v39  ;;  %v3072_v12 = vmul.f32 %v3070_v9, %v3051_v40 }
 0x855   : > { %v3079_v27 = vadd.f32 %v3369_v10, %v3071_v11  ;;  %v3080_v15 = vadd.f32 %v3369_v10, %v3072_v12 }
 0x857   : > { %3081 = vst.msk [vmem:[#allocation2] sm:$0xff] %vm676_vm2, %v3079_v27  ;;  %3082 = vst.msk [vmem:[#allocation2 + $0x8] sm:$0xff] %vm676_vm2, %v3080_v15  ;;  %v3089_v21 = vsel (!%p3370_p4), %vm676_vm2, %v3079_v27, 0.0  ;;  %v3096_v13 = vsel (!%p3370_p4), %vm676_vm2, %v3080_v15, 0.0 }
 0x858   : > { %3087 = vst.msk [vmem:[#allocation6] sm:$0xff] %vm676_vm2, %v3079_v27  ;;  %3088 = vst.msk [vmem:[#allocation6 + $0x8] sm:$0xff] %vm676_vm2, %v3080_v15  ;;  %v3090_v16 = vrot.slane %v3089_v21, 4  ;;  %v3097_v31 = vrot.slane %v3096_v13, 4 }
 0x85a   : > { %v3091_v17 = vadd.f32 %v3090_v16, %v3089_v21  ;;  %v3098_v18 = vadd.f32 %v3097_v31, %v3096_v13 }
 0x85c   : > { %v3092_v45 = vrot.slane %v3091_v17, 2  ;;  %v3099_v19 = vrot.slane %v3098_v18, 2 }
 0x85e   : > { %v3093_v1 = vadd.f32 %v3092_v45, %v3091_v17  ;;  %v3100_v20 = vadd.f32 %v3099_v19, %v3098_v18 }
 0x860   : > { %v3094_v52 = vrot.slane %v3093_v1, 1  ;;  %v3101_v53 = vrot.slane %v3100_v20, 1 }
 0x862   : > { %v3095_v58 = vadd.f32 %v3094_v52, %v3093_v1  ;;  %v3102_v59 = vadd.f32 %v3101_v53, %v3100_v20 }
 0x864   : > { %v3104_v14 = vmul.f32 0.125, %v3095_v58  ;;  %v3105_v50 = vmul.f32 0.125, %v3102_v59 }
 0x866   : > { %v3109_v36 = vsel %vm3108_vm8, %v3105_v50, %v3104_v14 }
 0x867   : > { %3112 = vst.msk [vmem:[#allocation7] sm:$0x3] %vm3111_vm9, %v3109_v36 }
 0x868 PF: > { %p3577_p6 = scmp.eq.s32.totalorder %s3869_s30, 1  ;;  %s3785_s20 = smov [#allocation6]  }
 0x869   : > { %s3119_s21 = sshll.u32 %s3785_s20, 4  ;;  %s3120_s21 = int_to_ptr.vmem [resolvable:$true] %s3119_s21 }
 0x86a   : > { %s3698_s22 = scalar_lea.vmem %s3120_s21, 256  ;;  %p3705_p13 = scmp.lt.s32.totalorder %s3120_s21, %s3120_s21 }
 0x86b   : > { %p3699_p10 = scmp.ne.s32.totalorder %s3120_s21, %s3698_s22  ;;  %p3706_p0 = scmp.lt.s32.totalorder %s3698_s22, %s3698_s22 }
 0x86d   : > { %p3700_p11 = pnand %p3699_p10, %p3577_p6  ;;  %p3707_p1 = por %p3706_p0, %p3705_p13 }
 0x86f   : > { %p3701_p12 = pneg %p3700_p11 }
 0x871   : > { %p3708_p5 = pnand %p3707_p1, %p3701_p12 }
 0x873   : > { %3711 = shalt.err (!%p3708_p5)
}
 0x874   : > { %s4530_s1 = sld [smem:[#allocation17_spill]] }
 0x87a   : > { %s3712_s3 = scalar_lea.hbm %s4530_s1, 256 }
 0x87b   : > { %p3713_p7 = scmp.ne.s32.totalorder %s4530_s1, %s3712_s3  ;;  %p3718_p2 = scmp.lt.u32.totalorder %s3712_s3, %s4530_s1 }
 0x87d   : > { %p3714_p9 = pnand %p3713_p7, %p3577_p6 }
 0x87f   : > { %p3715_p8 = pneg %p3714_p9 }
 0x881   : > { %p3720_p3 = pnand %p3718_p2, %p3715_p8 }
 0x883   : > { %3723 = shalt.err (!%p3720_p3)
}
 0x884   : > { %s3786_s0 = smov 128   ;;  %s3787_s5 = smov [#allocation7]  }
 0x885   : > { %3564 = dma.vmem_to_hbm [thread:$0]  (%p3577_p6), %s3120_s21, 256, %s4530_s1, [#allocation5], %s3786_s0, %s3786_s0, %s3783_s16  }
 0x886   : > { %s3133_s15 = sshll.u32 %s3787_s5, 4  ;;  %s3134_s15 = int_to_ptr.vmem [resolvable:$true] %s3133_s15 }
 0x887   : > { %s3724_s25 = scalar_lea.vmem %s3134_s15, 32  ;;  %p3731_p12 = scmp.lt.s32.totalorder %s3134_s15, %s3134_s15 }
 0x888   : > { %p3725_p4 = scmp.ne.s32.totalorder %s3134_s15, %s3724_s25  ;;  %p3732_p13 = scmp.lt.s32.totalorder %s3724_s25, %s3724_s25 }
 0x88a   : > { %p3726_p10 = pnand %p3725_p4, %p3577_p6  ;;  %p3733_p0 = por %p3732_p13, %p3731_p12 }
 0x88c   : > { %p3727_p11 = pneg %p3726_p10 }
 0x88e   : > { %p3734_p1 = pnand %p3733_p0, %p3727_p11 }
 0x890   : > { %3737 = shalt.err (!%p3734_p1)
}
 0x891   : > { %s4531_s27 = sld [smem:[#allocation18_spill]] }
 0x897   : > { %s3738_s20 = scalar_lea.hbm %s4531_s27, 32 }
 0x898   : > { %p3739_p5 = scmp.ne.s32.totalorder %s4531_s27, %s3738_s20  ;;  %p3744_p8 = scmp.lt.u32.totalorder %s3738_s20, %s4531_s27 }
 0x89a   : > { %p3740_p7 = pnand %p3739_p5, %p3577_p6 }
 0x89c   : > { %p3741_p9 = pneg %p3740_p7 }
 0x89e   : > { %p3746_p2 = pnand %p3744_p8, %p3741_p9 }
 0x8a0   : > { %3749 = shalt.err (!%p3746_p2)
}
 0x8a1   : > { %3566 = dma.vmem_to_hbm [thread:$0]  (%p3577_p6), %s3134_s15, 32, %s4531_s27, [#allocation8]  }
 0x8a2   : > { %3759 = dma.done.wait (%p3577_p6), [#allocation5], 256  }
 0x8a3   : > { %3761 = vsyncadd (%p3577_p6), [#allocation5], 4294967040 }
 0x8a4   : > { %3763 = dma.done.wait (%p3577_p6), [#allocation8], 32  }
 0x8a5   : > { %3765 = vsyncadd (%p3577_p6), [#allocation8], 4294967264 }
 0x8a6 PF: > { %s4532_s14 = sld [smem:[#allocation12_spill]] }
 0x8ac   : > { %s28_s29 = sadd.s32 1, %s4532_s14  }
 0x8ad   : > { %p25_p3 = scmp.ge.s32.totalorder %s28_s29, 4  }
 0x8af   :  { %27 = sbr.rel (!%p25_p3) target bundleno = 10 (0xa), region = 153 }
 0x8b6   :  { %3150 = vsyncpa [#allocation4], 1 }
 0x8b7   :  { %3152 = vsyncpa [#allocation4 + $0x1], 1 }
 0x8b8   :  { %3153 = vsyncpa [#allocation5], 1 }
 0x8b9   :  { %3155 = vsyncpa [#allocation5 + $0x1], 1 }
 0x8ba   :  { %3156 = vsyncpa [#allocation8], 1 }

</bundles_post_ra>
